<compile_context>
chip_gen: v7x
topology: tpu7x:2x2x1
jax: 0.10.0
libtpu: 0.0.40
codegen_flags: <defaults>
</compile_context>

<pallas_src>
import jax
import jax.numpy as jnp
from jax.experimental import pallas as pl
from jax.experimental.pallas import tpu as pltpu

SEQ = 14
HID = 32
GATES = 4 * HID


def _round_up(n, m):
    return ((n + m - 1) // m) * m


def net_kernel(x_ref, wih_ref, whh_ref, b_ref, wlin_ref, blin_ref,
               out_ref, xb_ref):
    """One batch tile: full LSTM recurrence + fused Linear head."""
    TB = x_ref.shape[0]

    wih = wih_ref[...]      # (1,   4H)  W_ih^T, g-gate columns pre-scaled by 2
    whh = whh_ref[...]      # (HID, 4H)  W_hh^T, g-gate columns pre-scaled by 2
    b = b_ref[...]          # (1,   4H)  b_ih + b_hh, g-gate columns pre-scaled
    wlin = wlin_ref[...]    # (SEQ, HID) lane-dense Linear weight

    # Input/bias contribution is independent of h: hoist it off the serial
    # recurrence chain into a VMEM scratch (SEQ, TB, 4H).
    for t in range(SEQ):
        xb_ref[t] = x_ref[:, t:t + 1] * wih + b                      # (TB, 4H)

    h = jnp.zeros((TB, HID), jnp.float32)
    c = jnp.zeros((TB, HID), jnp.float32)
    acc = jnp.zeros((TB, HID), jnp.float32)   # fused-Linear accumulator

    # SEQ is small & static -> unrolled Python loop (visible to LLO scheduler).
    for t in range(SEQ):
        gates = xb_ref[t] + jnp.dot(h, whh,
                                    preferred_element_type=jnp.float32)
        # One full-width (TB, 4H) sigmoid; tanh(g) recovered as 2*sigmoid(2g)-1
        # because the g-gate columns were pre-scaled by 2 in the wrapper.
        s = jax.nn.sigmoid(gates)
        i_g = s[:, 0 * HID:1 * HID]
        f_g = s[:, 1 * HID:2 * HID]
        g_g = 2.0 * s[:, 2 * HID:3 * HID] - 1.0
        o_g = s[:, 3 * HID:4 * HID]
        c = f_g * c + i_g * g_g
        h = o_g * jnp.tanh(c)
        # Fused Linear(32*SEQ, 1): per-timestep VPU FMA instead of N=1 matmul.
        acc = acc + h * wlin[t:t + 1, :]                             # (TB, HID)

    out_ref[...] = jnp.sum(acc, axis=-1, keepdims=True) + blin_ref[0, 0]


def net_forward(x, params, *, block_b=128):
    """x: (B, SEQ, 1) float32 -> (B, 1) float32."""
    B = x.shape[0]
    x2 = x.reshape(B, SEQ).astype(jnp.float32)

    # Batch tile: multiple of 8 sublanes; pad B so every block is full.
    tb = min(block_b, _round_up(B, 8))
    b_pad = _round_up(B, tb)
    if b_pad != B:
        x2 = jnp.pad(x2, ((0, b_pad - B), (0, 0)))

    # Pre-scale the g-gate columns by 2 so tanh(g) == 2*sigmoid(gates_g) - 1.
    scale = jnp.ones((GATES,), jnp.float32).at[2 * HID:3 * HID].set(2.0)
    wih_t = (params["w_ih"].astype(jnp.float32).T * scale).reshape(1, GATES)
    whh_t = params["w_hh"].astype(jnp.float32).T * scale               # (HID, 4H)
    b = ((params["b_ih"] + params["b_hh"]).astype(jnp.float32)
         * scale).reshape(1, GATES)
    wlin = params["w_lin"].astype(jnp.float32).reshape(SEQ, HID)       # lane-dense
    blin = params["b_lin"].astype(jnp.float32).reshape(1, 1)

    out = pl.pallas_call(
        net_kernel,
        out_shape=jax.ShapeDtypeStruct((b_pad, 1), jnp.float32),
        grid_spec=pltpu.PrefetchScalarGridSpec(
            num_scalar_prefetch=0,
            grid=(b_pad // tb,),
            in_specs=[
                pl.BlockSpec((tb, SEQ), lambda i: (i, 0)),       # x tile
                pl.BlockSpec((1, GATES), lambda i: (0, 0)),      # W_ih^T
                pl.BlockSpec((HID, GATES), lambda i: (0, 0)),    # W_hh^T
                pl.BlockSpec((1, GATES), lambda i: (0, 0)),      # bias
                pl.BlockSpec((SEQ, HID), lambda i: (0, 0)),      # W_lin
                pl.BlockSpec(memory_space=pltpu.MemorySpace.SMEM),  # b_lin scalar
            ],
            out_specs=pl.BlockSpec((tb, 1), lambda i: (i, 0)),
            scratch_shapes=[pltpu.VMEM((SEQ, tb, GATES), jnp.float32)],
        ),
        compiler_params=pltpu.CompilerParams(
            dimension_semantics=("parallel",)),
    )(x2, wih_t, whh_t, b, wlin, blin)
    return out[:B]


def net_forward_ref(x, params):
    """Pure-JAX reference matching torch.nn.LSTM + Linear semantics."""
    B = x.shape[0]
    w_ih, w_hh = params["w_ih"], params["w_hh"]
    b_ih, b_hh = params["b_ih"], params["b_hh"]
    h = jnp.zeros((B, HID), jnp.float32)
    c = jnp.zeros((B, HID), jnp.float32)
    outs = []
    for t in range(SEQ):
        x_t = x[:, t, :]                                            # (B, 1)
        gates = x_t @ w_ih.T + b_ih + h @ w_hh.T + b_hh
        i_g = jax.nn.sigmoid(gates[:, 0 * HID:1 * HID])
        f_g = jax.nn.sigmoid(gates[:, 1 * HID:2 * HID])
        g_g = jnp.tanh(gates[:, 2 * HID:3 * HID])
        o_g = jax.nn.sigmoid(gates[:, 3 * HID:4 * HID])
        c = f_g * c + i_g * g_g
        h = o_g * jnp.tanh(c)
        outs.append(h)
    seq_out = jnp.stack(outs, axis=1).reshape(B, SEQ * HID)
    return seq_out @ params["w_lin"].T + params["b_lin"]


def init_params(key):
    """Deterministic init mimicking PyTorch default uniform(-k, k)."""
    k_lstm = 1.0 / jnp.sqrt(HID)
    k_lin = 1.0 / jnp.sqrt(HID * SEQ)
    ks = jax.random.split(key, 6)
    u = lambda k, shape, bound: jax.random.uniform(
        k, shape, jnp.float32, minval=-bound, maxval=bound)
    return {
        "w_ih": u(ks[0], (4 * HID, 1), k_lstm),
        "w_hh": u(ks[1], (4 * HID, HID), k_lstm),
        "b_ih": u(ks[2], (4 * HID,), k_lstm),
        "b_hh": u(ks[3], (4 * HID,), k_lstm),
        "w_lin": u(ks[4], (1, HID * SEQ), k_lin),
        "b_lin": u(ks[5], (1,), k_lin),
    }


if __name__ == "__main__":
    key = jax.random.PRNGKey(0)
    k_p, k_x = jax.random.split(key)
    params = init_params(k_p)
    B = 2
    x = jax.random.normal(k_x, (B, SEQ, 1), dtype=jnp.float32)

    out = net_forward(x, params)
    out = jax.block_until_ready(out)

    ref = jax.block_until_ready(net_forward_ref(x, params))
    assert out.shape == (B, 1)
    # tanh-via-sigmoid rewrite is exact mathematically; allow tiny fp drift.
    assert jnp.allclose(out, ref, atol=1e-4, rtol=1e-4), (out, ref)
    print("KERNEL_OK")
</pallas_src>

<mosaic_0001>
module attributes {stable_mosaic.version = 11 : i64} {
  func.func @net_kernel(%arg0: i32, %arg1: memref<8x14xf32, #tpu.memory_space<vmem>>, %arg2: memref<1x128xf32, #tpu.memory_space<vmem>>, %arg3: memref<32x128xf32, #tpu.memory_space<vmem>>, %arg4: memref<1x128xf32, #tpu.memory_space<vmem>>, %arg5: memref<14x32xf32, #tpu.memory_space<vmem>>, %arg6: memref<1x1xf32, #tpu.memory_space<smem>>, %arg7: memref<8x1xf32, #tpu.memory_space<vmem>>, %arg8: memref<14x8x128xf32, #tpu.memory_space<vmem>>) attributes {dimension_semantics = [#tpu.dimension_semantics<parallel>], iteration_bounds = array<i64: 1>, scalar_prefetch = 0 : i64, scratch_operands = 1 : i64, tpu.core_type = #tpu.core_type<tc>, window_params = [{transform_indices = @transform_0, window_bounds = array<i64: 8, 14>}, {pipeline_mode = #tpu.pipeline_mode<synchronous>, transform_indices = @transform_1, window_bounds = array<i64: 1, 128>}, {pipeline_mode = #tpu.pipeline_mode<synchronous>, transform_indices = @transform_2, window_bounds = array<i64: 32, 128>}, {pipeline_mode = #tpu.pipeline_mode<synchronous>, transform_indices = @transform_3, window_bounds = array<i64: 1, 128>}, {pipeline_mode = #tpu.pipeline_mode<synchronous>, transform_indices = @transform_4, window_bounds = array<i64: 14, 32>}, {transform_indices = @transform_5, window_bounds = array<i64: 1, 1>}, {transform_indices = @transform_6, window_bounds = array<i64: 8, 1>}]} {
    %c0 = arith.constant 0 : index
    %c0_0 = arith.constant 0 : index
    %0 = vector.load %arg2[%c0, %c0_0] : memref<1x128xf32, #tpu.memory_space<vmem>>, vector<1x128xf32>
    %c0_1 = arith.constant 0 : index
    %c0_2 = arith.constant 0 : index
    %1 = vector.load %arg3[%c0_1, %c0_2] : memref<32x128xf32, #tpu.memory_space<vmem>>, vector<32x128xf32>
    %c0_3 = arith.constant 0 : index
    %c0_4 = arith.constant 0 : index
    %2 = vector.load %arg4[%c0_3, %c0_4] : memref<1x128xf32, #tpu.memory_space<vmem>>, vector<1x128xf32>
    %c0_5 = arith.constant 0 : index
    %c0_6 = arith.constant 0 : index
    %3 = vector.load %arg5[%c0_5, %c0_6] : memref<14x32xf32, #tpu.memory_space<vmem>>, vector<14x32xf32>
    %c0_7 = arith.constant 0 : index
    %c0_8 = arith.constant 0 : index
    %4 = vector.load %arg1[%c0_7, %c0_8] : memref<8x14xf32, #tpu.memory_space<vmem>>, vector<8x1xf32>
    %5 = vector.broadcast %4 : vector<8x1xf32> to vector<8x128xf32>
    %6 = vector.broadcast %0 : vector<1x128xf32> to vector<8x128xf32>
    %7 = arith.mulf %5, %6 : vector<8x128xf32>
    %8 = vector.broadcast %2 : vector<1x128xf32> to vector<8x128xf32>
    %9 = arith.addf %7, %8 : vector<8x128xf32>
    %c0_9 = arith.constant 0 : index
    %c0_10 = arith.constant 0 : index
    %c0_11 = arith.constant 0 : index
    %10 = vector.load %arg8[%c0_9, %c0_10, %c0_11] : memref<14x8x128xf32, #tpu.memory_space<vmem>>, vector<1x8x128xf32>
    %11 = vector.shape_cast %10 : vector<1x8x128xf32> to vector<8x128xf32>
    %12 = vector.shape_cast %9 : vector<8x128xf32> to vector<1x8x128xf32>
    tpu.vector_store %arg8[%c0_9, %c0_10, %c0_11], %12 {strides = array<i32>} : memref<14x8x128xf32, #tpu.memory_space<vmem>>, vector<1x8x128xf32>,
    %c0_12 = arith.constant 0 : index
    %c1 = arith.constant 1 : index
    %13 = vector.load %arg1[%c0_12, %c1] : memref<8x14xf32, #tpu.memory_space<vmem>>, vector<8x1xf32>
    %14 = vector.broadcast %13 : vector<8x1xf32> to vector<8x128xf32>
    %15 = vector.broadcast %0 : vector<1x128xf32> to vector<8x128xf32>
    %16 = arith.mulf %14, %15 : vector<8x128xf32>
    %17 = vector.broadcast %2 : vector<1x128xf32> to vector<8x128xf32>
    %18 = arith.addf %16, %17 : vector<8x128xf32>
    %c1_13 = arith.constant 1 : index
    %c0_14 = arith.constant 0 : index
    %c0_15 = arith.constant 0 : index
    %19 = vector.load %arg8[%c1_13, %c0_14, %c0_15] : memref<14x8x128xf32, #tpu.memory_space<vmem>>, vector<1x8x128xf32>
    %20 = vector.shape_cast %19 : vector<1x8x128xf32> to vector<8x128xf32>
    %21 = vector.shape_cast %18 : vector<8x128xf32> to vector<1x8x128xf32>
    tpu.vector_store %arg8[%c1_13, %c0_14, %c0_15], %21 {strides = array<i32>} : memref<14x8x128xf32, #tpu.memory_space<vmem>>, vector<1x8x128xf32>,
    %c0_16 = arith.constant 0 : index
    %c2 = arith.constant 2 : index
    %22 = vector.load %arg1[%c0_16, %c2] : memref<8x14xf32, #tpu.memory_space<vmem>>, vector<8x1xf32>
    %23 = vector.broadcast %22 : vector<8x1xf32> to vector<8x128xf32>
    %24 = vector.broadcast %0 : vector<1x128xf32> to vector<8x128xf32>
    %25 = arith.mulf %23, %24 : vector<8x128xf32>
    %26 = vector.broadcast %2 : vector<1x128xf32> to vector<8x128xf32>
    %27 = arith.addf %25, %26 : vector<8x128xf32>
    %c2_17 = arith.constant 2 : index
    %c0_18 = arith.constant 0 : index
    %c0_19 = arith.constant 0 : index
    %28 = vector.load %arg8[%c2_17, %c0_18, %c0_19] : memref<14x8x128xf32, #tpu.memory_space<vmem>>, vector<1x8x128xf32>
    %29 = vector.shape_cast %28 : vector<1x8x128xf32> to vector<8x128xf32>
    %30 = vector.shape_cast %27 : vector<8x128xf32> to vector<1x8x128xf32>
    tpu.vector_store %arg8[%c2_17, %c0_18, %c0_19], %30 {strides = array<i32>} : memref<14x8x128xf32, #tpu.memory_space<vmem>>, vector<1x8x128xf32>,
    %c0_20 = arith.constant 0 : index
    %c3 = arith.constant 3 : index
    %31 = vector.load %arg1[%c0_20, %c3] : memref<8x14xf32, #tpu.memory_space<vmem>>, vector<8x1xf32>
    %32 = vector.broadcast %31 : vector<8x1xf32> to vector<8x128xf32>
    %33 = vector.broadcast %0 : vector<1x128xf32> to vector<8x128xf32>
    %34 = arith.mulf %32, %33 : vector<8x128xf32>
    %35 = vector.broadcast %2 : vector<1x128xf32> to vector<8x128xf32>
    %36 = arith.addf %34, %35 : vector<8x128xf32>
    %c3_21 = arith.constant 3 : index
    %c0_22 = arith.constant 0 : index
    %c0_23 = arith.constant 0 : index
    %37 = vector.load %arg8[%c3_21, %c0_22, %c0_23] : memref<14x8x128xf32, #tpu.memory_space<vmem>>, vector<1x8x128xf32>
    %38 = vector.shape_cast %37 : vector<1x8x128xf32> to vector<8x128xf32>
    %39 = vector.shape_cast %36 : vector<8x128xf32> to vector<1x8x128xf32>
    tpu.vector_store %arg8[%c3_21, %c0_22, %c0_23], %39 {strides = array<i32>} : memref<14x8x128xf32, #tpu.memory_space<vmem>>, vector<1x8x128xf32>,
    %c0_24 = arith.constant 0 : index
    %c4 = arith.constant 4 : index
    %40 = vector.load %arg1[%c0_24, %c4] : memref<8x14xf32, #tpu.memory_space<vmem>>, vector<8x1xf32>
    %41 = vector.broadcast %40 : vector<8x1xf32> to vector<8x128xf32>
    %42 = vector.broadcast %0 : vector<1x128xf32> to vector<8x128xf32>
    %43 = arith.mulf %41, %42 : vector<8x128xf32>
    %44 = vector.broadcast %2 : vector<1x128xf32> to vector<8x128xf32>
    %45 = arith.addf %43, %44 : vector<8x128xf32>
    %c4_25 = arith.constant 4 : index
    %c0_26 = arith.constant 0 : index
    %c0_27 = arith.constant 0 : index
    %46 = vector.load %arg8[%c4_25, %c0_26, %c0_27] : memref<14x8x128xf32, #tpu.memory_space<vmem>>, vector<1x8x128xf32>
    %47 = vector.shape_cast %46 : vector<1x8x128xf32> to vector<8x128xf32>
    %48 = vector.shape_cast %45 : vector<8x128xf32> to vector<1x8x128xf32>
    tpu.vector_store %arg8[%c4_25, %c0_26, %c0_27], %48 {strides = array<i32>} : memref<14x8x128xf32, #tpu.memory_space<vmem>>, vector<1x8x128xf32>,
    %c0_28 = arith.constant 0 : index
    %c5 = arith.constant 5 : index
    %49 = vector.load %arg1[%c0_28, %c5] : memref<8x14xf32, #tpu.memory_space<vmem>>, vector<8x1xf32>
    %50 = vector.broadcast %49 : vector<8x1xf32> to vector<8x128xf32>
    %51 = vector.broadcast %0 : vector<1x128xf32> to vector<8x128xf32>
    %52 = arith.mulf %50, %51 : vector<8x128xf32>
    %53 = vector.broadcast %2 : vector<1x128xf32> to vector<8x128xf32>
    %54 = arith.addf %52, %53 : vector<8x128xf32>
    %c5_29 = arith.constant 5 : index
    %c0_30 = arith.constant 0 : index
    %c0_31 = arith.constant 0 : index
    %55 = vector.load %arg8[%c5_29, %c0_30, %c0_31] : memref<14x8x128xf32, #tpu.memory_space<vmem>>, vector<1x8x128xf32>
    %56 = vector.shape_cast %55 : vector<1x8x128xf32> to vector<8x128xf32>
    %57 = vector.shape_cast %54 : vector<8x128xf32> to vector<1x8x128xf32>
    tpu.vector_store %arg8[%c5_29, %c0_30, %c0_31], %57 {strides = array<i32>} : memref<14x8x128xf32, #tpu.memory_space<vmem>>, vector<1x8x128xf32>,
    %c0_32 = arith.constant 0 : index
    %c6 = arith.constant 6 : index
    %58 = vector.load %arg1[%c0_32, %c6] : memref<8x14xf32, #tpu.memory_space<vmem>>, vector<8x1xf32>
    %59 = vector.broadcast %58 : vector<8x1xf32> to vector<8x128xf32>
    %60 = vector.broadcast %0 : vector<1x128xf32> to vector<8x128xf32>
    %61 = arith.mulf %59, %60 : vector<8x128xf32>
    %62 = vector.broadcast %2 : vector<1x128xf32> to vector<8x128xf32>
    %63 = arith.addf %61, %62 : vector<8x128xf32>
    %c6_33 = arith.constant 6 : index
    %c0_34 = arith.constant 0 : index
    %c0_35 = arith.constant 0 : index
    %64 = vector.load %arg8[%c6_33, %c0_34, %c0_35] : memref<14x8x128xf32, #tpu.memory_space<vmem>>, vector<1x8x128xf32>
    %65 = vector.shape_cast %64 : vector<1x8x128xf32> to vector<8x128xf32>
    %66 = vector.shape_cast %63 : vector<8x128xf32> to vector<1x8x128xf32>
    tpu.vector_store %arg8[%c6_33, %c0_34, %c0_35], %66 {strides = array<i32>} : memref<14x8x128xf32, #tpu.memory_space<vmem>>, vector<1x8x128xf32>,
    %c0_36 = arith.constant 0 : index
    %c7 = arith.constant 7 : index
    %67 = vector.load %arg1[%c0_36, %c7] : memref<8x14xf32, #tpu.memory_space<vmem>>, vector<8x1xf32>
    %68 = vector.broadcast %67 : vector<8x1xf32> to vector<8x128xf32>
    %69 = vector.broadcast %0 : vector<1x128xf32> to vector<8x128xf32>
    %70 = arith.mulf %68, %69 : vector<8x128xf32>
    %71 = vector.broadcast %2 : vector<1x128xf32> to vector<8x128xf32>
    %72 = arith.addf %70, %71 : vector<8x128xf32>
    %c7_37 = arith.constant 7 : index
    %c0_38 = arith.constant 0 : index
    %c0_39 = arith.constant 0 : index
    %73 = vector.load %arg8[%c7_37, %c0_38, %c0_39] : memref<14x8x128xf32, #tpu.memory_space<vmem>>, vector<1x8x128xf32>
    %74 = vector.shape_cast %73 : vector<1x8x128xf32> to vector<8x128xf32>
    %75 = vector.shape_cast %72 : vector<8x128xf32> to vector<1x8x128xf32>
    tpu.vector_store %arg8[%c7_37, %c0_38, %c0_39], %75 {strides = array<i32>} : memref<14x8x128xf32, #tpu.memory_space<vmem>>, vector<1x8x128xf32>,
    %c0_40 = arith.constant 0 : index
    %c8 = arith.constant 8 : index
    %76 = vector.load %arg1[%c0_40, %c8] : memref<8x14xf32, #tpu.memory_space<vmem>>, vector<8x1xf32>
    %77 = vector.broadcast %76 : vector<8x1xf32> to vector<8x128xf32>
    %78 = vector.broadcast %0 : vector<1x128xf32> to vector<8x128xf32>
    %79 = arith.mulf %77, %78 : vector<8x128xf32>
    %80 = vector.broadcast %2 : vector<1x128xf32> to vector<8x128xf32>
    %81 = arith.addf %79, %80 : vector<8x128xf32>
    %c8_41 = arith.constant 8 : index
    %c0_42 = arith.constant 0 : index
    %c0_43 = arith.constant 0 : index
    %82 = vector.load %arg8[%c8_41, %c0_42, %c0_43] : memref<14x8x128xf32, #tpu.memory_space<vmem>>, vector<1x8x128xf32>
    %83 = vector.shape_cast %82 : vector<1x8x128xf32> to vector<8x128xf32>
    %84 = vector.shape_cast %81 : vector<8x128xf32> to vector<1x8x128xf32>
    tpu.vector_store %arg8[%c8_41, %c0_42, %c0_43], %84 {strides = array<i32>} : memref<14x8x128xf32, #tpu.memory_space<vmem>>, vector<1x8x128xf32>,
    %c0_44 = arith.constant 0 : index
    %c9 = arith.constant 9 : index
    %85 = vector.load %arg1[%c0_44, %c9] : memref<8x14xf32, #tpu.memory_space<vmem>>, vector<8x1xf32>
    %86 = vector.broadcast %85 : vector<8x1xf32> to vector<8x128xf32>
    %87 = vector.broadcast %0 : vector<1x128xf32> to vector<8x128xf32>
    %88 = arith.mulf %86, %87 : vector<8x128xf32>
    %89 = vector.broadcast %2 : vector<1x128xf32> to vector<8x128xf32>
    %90 = arith.addf %88, %89 : vector<8x128xf32>
    %c9_45 = arith.constant 9 : index
    %c0_46 = arith.constant 0 : index
    %c0_47 = arith.constant 0 : index
    %91 = vector.load %arg8[%c9_45, %c0_46, %c0_47] : memref<14x8x128xf32, #tpu.memory_space<vmem>>, vector<1x8x128xf32>
    %92 = vector.shape_cast %91 : vector<1x8x128xf32> to vector<8x128xf32>
    %93 = vector.shape_cast %90 : vector<8x128xf32> to vector<1x8x128xf32>
    tpu.vector_store %arg8[%c9_45, %c0_46, %c0_47], %93 {strides = array<i32>} : memref<14x8x128xf32, #tpu.memory_space<vmem>>, vector<1x8x128xf32>,
    %c0_48 = arith.constant 0 : index
    %c10 = arith.constant 10 : index
    %94 = vector.load %arg1[%c0_48, %c10] : memref<8x14xf32, #tpu.memory_space<vmem>>, vector<8x1xf32>
    %95 = vector.broadcast %94 : vector<8x1xf32> to vector<8x128xf32>
    %96 = vector.broadcast %0 : vector<1x128xf32> to vector<8x128xf32>
    %97 = arith.mulf %95, %96 : vector<8x128xf32>
    %98 = vector.broadcast %2 : vector<1x128xf32> to vector<8x128xf32>
    %99 = arith.addf %97, %98 : vector<8x128xf32>
    %c10_49 = arith.constant 10 : index
    %c0_50 = arith.constant 0 : index
    %c0_51 = arith.constant 0 : index
    %100 = vector.load %arg8[%c10_49, %c0_50, %c0_51] : memref<14x8x128xf32, #tpu.memory_space<vmem>>, vector<1x8x128xf32>
    %101 = vector.shape_cast %100 : vector<1x8x128xf32> to vector<8x128xf32>
    %102 = vector.shape_cast %99 : vector<8x128xf32> to vector<1x8x128xf32>
    tpu.vector_store %arg8[%c10_49, %c0_50, %c0_51], %102 {strides = array<i32>} : memref<14x8x128xf32, #tpu.memory_space<vmem>>, vector<1x8x128xf32>,
    %c0_52 = arith.constant 0 : index
    %c11 = arith.constant 11 : index
    %103 = vector.load %arg1[%c0_52, %c11] : memref<8x14xf32, #tpu.memory_space<vmem>>, vector<8x1xf32>
    %104 = vector.broadcast %103 : vector<8x1xf32> to vector<8x128xf32>
    %105 = vector.broadcast %0 : vector<1x128xf32> to vector<8x128xf32>
    %106 = arith.mulf %104, %105 : vector<8x128xf32>
    %107 = vector.broadcast %2 : vector<1x128xf32> to vector<8x128xf32>
    %108 = arith.addf %106, %107 : vector<8x128xf32>
    %c11_53 = arith.constant 11 : index
    %c0_54 = arith.constant 0 : index
    %c0_55 = arith.constant 0 : index
    %109 = vector.load %arg8[%c11_53, %c0_54, %c0_55] : memref<14x8x128xf32, #tpu.memory_space<vmem>>, vector<1x8x128xf32>
    %110 = vector.shape_cast %109 : vector<1x8x128xf32> to vector<8x128xf32>
    %111 = vector.shape_cast %108 : vector<8x128xf32> to vector<1x8x128xf32>
    tpu.vector_store %arg8[%c11_53, %c0_54, %c0_55], %111 {strides = array<i32>} : memref<14x8x128xf32, #tpu.memory_space<vmem>>, vector<1x8x128xf32>,
    %c0_56 = arith.constant 0 : index
    %c12 = arith.constant 12 : index
    %112 = vector.load %arg1[%c0_56, %c12] : memref<8x14xf32, #tpu.memory_space<vmem>>, vector<8x1xf32>
    %113 = vector.broadcast %112 : vector<8x1xf32> to vector<8x128xf32>
    %114 = vector.broadcast %0 : vector<1x128xf32> to vector<8x128xf32>
    %115 = arith.mulf %113, %114 : vector<8x128xf32>
    %116 = vector.broadcast %2 : vector<1x128xf32> to vector<8x128xf32>
    %117 = arith.addf %115, %116 : vector<8x128xf32>
    %c12_57 = arith.constant 12 : index
    %c0_58 = arith.constant 0 : index
    %c0_59 = arith.constant 0 : index
    %118 = vector.load %arg8[%c12_57, %c0_58, %c0_59] : memref<14x8x128xf32, #tpu.memory_space<vmem>>, vector<1x8x128xf32>
    %119 = vector.shape_cast %118 : vector<1x8x128xf32> to vector<8x128xf32>
    %120 = vector.shape_cast %117 : vector<8x128xf32> to vector<1x8x128xf32>
    tpu.vector_store %arg8[%c12_57, %c0_58, %c0_59], %120 {strides = array<i32>} : memref<14x8x128xf32, #tpu.memory_space<vmem>>, vector<1x8x128xf32>,
    %c0_60 = arith.constant 0 : index
    %c13 = arith.constant 13 : index
    %121 = vector.load %arg1[%c0_60, %c13] : memref<8x14xf32, #tpu.memory_space<vmem>>, vector<8x1xf32>
    %122 = vector.broadcast %121 : vector<8x1xf32> to vector<8x128xf32>
    %123 = vector.broadcast %0 : vector<1x128xf32> to vector<8x128xf32>
    %124 = arith.mulf %122, %123 : vector<8x128xf32>
    %125 = vector.broadcast %2 : vector<1x128xf32> to vector<8x128xf32>
    %126 = arith.addf %124, %125 : vector<8x128xf32>
    %c13_61 = arith.constant 13 : index
    %c0_62 = arith.constant 0 : index
    %c0_63 = arith.constant 0 : index
    %127 = vector.load %arg8[%c13_61, %c0_62, %c0_63] : memref<14x8x128xf32, #tpu.memory_space<vmem>>, vector<1x8x128xf32>
    %128 = vector.shape_cast %127 : vector<1x8x128xf32> to vector<8x128xf32>
    %129 = vector.shape_cast %126 : vector<8x128xf32> to vector<1x8x128xf32>
    tpu.vector_store %arg8[%c13_61, %c0_62, %c0_63], %129 {strides = array<i32>} : memref<14x8x128xf32, #tpu.memory_space<vmem>>, vector<1x8x128xf32>,
    %cst = arith.constant 0.000000e+00 : f32
    %130 = vector.broadcast %cst : f32 to vector<8x32xf32>
    %cst_64 = arith.constant 0.000000e+00 : f32
    %131 = vector.broadcast %cst_64 : f32 to vector<8x32xf32>
    %cst_65 = arith.constant 0.000000e+00 : f32
    %132 = vector.broadcast %cst_65 : f32 to vector<8x32xf32>
    %c0_66 = arith.constant 0 : index
    %c0_67 = arith.constant 0 : index
    %c0_68 = arith.constant 0 : index
    %133 = vector.load %arg8[%c0_66, %c0_67, %c0_68] : memref<14x8x128xf32, #tpu.memory_space<vmem>>, vector<1x8x128xf32>
    %134 = vector.shape_cast %133 : vector<1x8x128xf32> to vector<8x128xf32>
    %cst_69 = arith.constant dense<0.000000e+00> : vector<8x128xf32>
    %135 = tpu.matmul %130, %1, %cst_69 {dimension_numbers = #tpu.dot_dimension_numbers<[1], [0], [0], [1], [0, 0, 1, 1], [], []>} : vector<8x32xf32>, vector<32x128xf32>, vector<8x128xf32> -> vector<8x128xf32>
    %136 = arith.addf %134, %135 : vector<8x128xf32>
    %137 = arith.negf %136 : vector<8x128xf32>
    %138 = math.exp %137 : vector<8x128xf32>
    %cst_70 = arith.constant 1.000000e+00 : f32
    %139 = vector.broadcast %cst_70 : f32 to vector<8x128xf32>
    %140 = arith.addf %139, %138 : vector<8x128xf32>
    %141 = arith.divf %139, %140 : vector<8x128xf32>
    %142 = vector.extract_strided_slice %141 {offsets = [0, 0], sizes = [8, 32], strides = [1, 1]} : vector<8x128xf32> to vector<8x32xf32>
    %143 = vector.extract_strided_slice %141 {offsets = [0, 32], sizes = [8, 32], strides = [1, 1]} : vector<8x128xf32> to vector<8x32xf32>
    %144 = vector.extract_strided_slice %141 {offsets = [0, 64], sizes = [8, 32], strides = [1, 1]} : vector<8x128xf32> to vector<8x32xf32>
    %cst_71 = arith.constant 2.000000e+00 : f32
    %145 = vector.broadcast %cst_71 : f32 to vector<8x32xf32>
    %146 = arith.mulf %145, %144 : vector<8x32xf32>
    %cst_72 = arith.constant 1.000000e+00 : f32
    %147 = vector.broadcast %cst_72 : f32 to vector<8x32xf32>
    %148 = arith.subf %146, %147 : vector<8x32xf32>
    %149 = vector.extract_strided_slice %141 {offsets = [0, 96], sizes = [8, 32], strides = [1, 1]} : vector<8x128xf32> to vector<8x32xf32>
    %150 = arith.mulf %143, %131 : vector<8x32xf32>
    %151 = arith.mulf %142, %148 : vector<8x32xf32>
    %152 = arith.addf %150, %151 : vector<8x32xf32>
    %153 = math.tanh %152 : vector<8x32xf32>
    %154 = arith.mulf %149, %153 : vector<8x32xf32>
    %155 = vector.extract_strided_slice %3 {offsets = [0, 0], sizes = [1, 32], strides = [1, 1]} : vector<14x32xf32> to vector<1x32xf32>
    %156 = vector.broadcast %155 : vector<1x32xf32> to vector<8x32xf32>
    %157 = arith.mulf %154, %156 : vector<8x32xf32>
    %158 = arith.addf %132, %157 : vector<8x32xf32>
    %c1_73 = arith.constant 1 : index
    %c0_74 = arith.constant 0 : index
    %c0_75 = arith.constant 0 : index
    %159 = vector.load %arg8[%c1_73, %c0_74, %c0_75] : memref<14x8x128xf32, #tpu.memory_space<vmem>>, vector<1x8x128xf32>
    %160 = vector.shape_cast %159 : vector<1x8x128xf32> to vector<8x128xf32>
    %cst_76 = arith.constant dense<0.000000e+00> : vector<8x128xf32>
    %161 = tpu.matmul %154, %1, %cst_76 {dimension_numbers = #tpu.dot_dimension_numbers<[1], [0], [0], [1], [0, 0, 1, 1], [], []>} : vector<8x32xf32>, vector<32x128xf32>, vector<8x128xf32> -> vector<8x128xf32>
    %162 = arith.addf %160, %161 : vector<8x128xf32>
    %163 = arith.negf %162 : vector<8x128xf32>
    %164 = math.exp %163 : vector<8x128xf32>
    %cst_77 = arith.constant 1.000000e+00 : f32
    %165 = vector.broadcast %cst_77 : f32 to vector<8x128xf32>
    %166 = arith.addf %165, %164 : vector<8x128xf32>
    %167 = arith.divf %165, %166 : vector<8x128xf32>
    %168 = vector.extract_strided_slice %167 {offsets = [0, 0], sizes = [8, 32], strides = [1, 1]} : vector<8x128xf32> to vector<8x32xf32>
    %169 = vector.extract_strided_slice %167 {offsets = [0, 32], sizes = [8, 32], strides = [1, 1]} : vector<8x128xf32> to vector<8x32xf32>
    %170 = vector.extract_strided_slice %167 {offsets = [0, 64], sizes = [8, 32], strides = [1, 1]} : vector<8x128xf32> to vector<8x32xf32>
    %cst_78 = arith.constant 2.000000e+00 : f32
    %171 = vector.broadcast %cst_78 : f32 to vector<8x32xf32>
    %172 = arith.mulf %171, %170 : vector<8x32xf32>
    %cst_79 = arith.constant 1.000000e+00 : f32
    %173 = vector.broadcast %cst_79 : f32 to vector<8x32xf32>
    %174 = arith.subf %172, %173 : vector<8x32xf32>
    %175 = vector.extract_strided_slice %167 {offsets = [0, 96], sizes = [8, 32], strides = [1, 1]} : vector<8x128xf32> to vector<8x32xf32>
    %176 = arith.mulf %169, %152 : vector<8x32xf32>
    %177 = arith.mulf %168, %174 : vector<8x32xf32>
    %178 = arith.addf %176, %177 : vector<8x32xf32>
    %179 = math.tanh %178 : vector<8x32xf32>
    %180 = arith.mulf %175, %179 : vector<8x32xf32>
    %181 = vector.extract_strided_slice %3 {offsets = [1, 0], sizes = [1, 32], strides = [1, 1]} : vector<14x32xf32> to vector<1x32xf32>
    %182 = vector.broadcast %181 : vector<1x32xf32> to vector<8x32xf32>
    %183 = arith.mulf %180, %182 : vector<8x32xf32>
    %184 = arith.addf %158, %183 : vector<8x32xf32>
    %c2_80 = arith.constant 2 : index
    %c0_81 = arith.constant 0 : index
    %c0_82 = arith.constant 0 : index
    %185 = vector.load %arg8[%c2_80, %c0_81, %c0_82] : memref<14x8x128xf32, #tpu.memory_space<vmem>>, vector<1x8x128xf32>
    %186 = vector.shape_cast %185 : vector<1x8x128xf32> to vector<8x128xf32>
    %cst_83 = arith.constant dense<0.000000e+00> : vector<8x128xf32>
    %187 = tpu.matmul %180, %1, %cst_83 {dimension_numbers = #tpu.dot_dimension_numbers<[1], [0], [0], [1], [0, 0, 1, 1], [], []>} : vector<8x32xf32>, vector<32x128xf32>, vector<8x128xf32> -> vector<8x128xf32>
    %188 = arith.addf %186, %187 : vector<8x128xf32>
    %189 = arith.negf %188 : vector<8x128xf32>
    %190 = math.exp %189 : vector<8x128xf32>
    %cst_84 = arith.constant 1.000000e+00 : f32
    %191 = vector.broadcast %cst_84 : f32 to vector<8x128xf32>
    %192 = arith.addf %191, %190 : vector<8x128xf32>
    %193 = arith.divf %191, %192 : vector<8x128xf32>
    %194 = vector.extract_strided_slice %193 {offsets = [0, 0], sizes = [8, 32], strides = [1, 1]} : vector<8x128xf32> to vector<8x32xf32>
    %195 = vector.extract_strided_slice %193 {offsets = [0, 32], sizes = [8, 32], strides = [1, 1]} : vector<8x128xf32> to vector<8x32xf32>
    %196 = vector.extract_strided_slice %193 {offsets = [0, 64], sizes = [8, 32], strides = [1, 1]} : vector<8x128xf32> to vector<8x32xf32>
    %cst_85 = arith.constant 2.000000e+00 : f32
    %197 = vector.broadcast %cst_85 : f32 to vector<8x32xf32>
    %198 = arith.mulf %197, %196 : vector<8x32xf32>
    %cst_86 = arith.constant 1.000000e+00 : f32
    %199 = vector.broadcast %cst_86 : f32 to vector<8x32xf32>
    %200 = arith.subf %198, %199 : vector<8x32xf32>
    %201 = vector.extract_strided_slice %193 {offsets = [0, 96], sizes = [8, 32], strides = [1, 1]} : vector<8x128xf32> to vector<8x32xf32>
    %202 = arith.mulf %195, %178 : vector<8x32xf32>
    %203 = arith.mulf %194, %200 : vector<8x32xf32>
    %204 = arith.addf %202, %203 : vector<8x32xf32>
    %205 = math.tanh %204 : vector<8x32xf32>
    %206 = arith.mulf %201, %205 : vector<8x32xf32>
    %207 = vector.extract_strided_slice %3 {offsets = [2, 0], sizes = [1, 32], strides = [1, 1]} : vector<14x32xf32> to vector<1x32xf32>
    %208 = vector.broadcast %207 : vector<1x32xf32> to vector<8x32xf32>
    %209 = arith.mulf %206, %208 : vector<8x32xf32>
    %210 = arith.addf %184, %209 : vector<8x32xf32>
    %c3_87 = arith.constant 3 : index
    %c0_88 = arith.constant 0 : index
    %c0_89 = arith.constant 0 : index
    %211 = vector.load %arg8[%c3_87, %c0_88, %c0_89] : memref<14x8x128xf32, #tpu.memory_space<vmem>>, vector<1x8x128xf32>
    %212 = vector.shape_cast %211 : vector<1x8x128xf32> to vector<8x128xf32>
    %cst_90 = arith.constant dense<0.000000e+00> : vector<8x128xf32>
    %213 = tpu.matmul %206, %1, %cst_90 {dimension_numbers = #tpu.dot_dimension_numbers<[1], [0], [0], [1], [0, 0, 1, 1], [], []>} : vector<8x32xf32>, vector<32x128xf32>, vector<8x128xf32> -> vector<8x128xf32>
    %214 = arith.addf %212, %213 : vector<8x128xf32>
    %215 = arith.negf %214 : vector<8x128xf32>
    %216 = math.exp %215 : vector<8x128xf32>
    %cst_91 = arith.constant 1.000000e+00 : f32
    %217 = vector.broadcast %cst_91 : f32 to vector<8x128xf32>
    %218 = arith.addf %217, %216 : vector<8x128xf32>
    %219 = arith.divf %217, %218 : vector<8x128xf32>
    %220 = vector.extract_strided_slice %219 {offsets = [0, 0], sizes = [8, 32], strides = [1, 1]} : vector<8x128xf32> to vector<8x32xf32>
    %221 = vector.extract_strided_slice %219 {offsets = [0, 32], sizes = [8, 32], strides = [1, 1]} : vector<8x128xf32> to vector<8x32xf32>
    %222 = vector.extract_strided_slice %219 {offsets = [0, 64], sizes = [8, 32], strides = [1, 1]} : vector<8x128xf32> to vector<8x32xf32>
    %cst_92 = arith.constant 2.000000e+00 : f32
    %223 = vector.broadcast %cst_92 : f32 to vector<8x32xf32>
    %224 = arith.mulf %223, %222 : vector<8x32xf32>
    %cst_93 = arith.constant 1.000000e+00 : f32
    %225 = vector.broadcast %cst_93 : f32 to vector<8x32xf32>
    %226 = arith.subf %224, %225 : vector<8x32xf32>
    %227 = vector.extract_strided_slice %219 {offsets = [0, 96], sizes = [8, 32], strides = [1, 1]} : vector<8x128xf32> to vector<8x32xf32>
    %228 = arith.mulf %221, %204 : vector<8x32xf32>
    %229 = arith.mulf %220, %226 : vector<8x32xf32>
    %230 = arith.addf %228, %229 : vector<8x32xf32>
    %231 = math.tanh %230 : vector<8x32xf32>
    %232 = arith.mulf %227, %231 : vector<8x32xf32>
    %233 = vector.extract_strided_slice %3 {offsets = [3, 0], sizes = [1, 32], strides = [1, 1]} : vector<14x32xf32> to vector<1x32xf32>
    %234 = vector.broadcast %233 : vector<1x32xf32> to vector<8x32xf32>
    %235 = arith.mulf %232, %234 : vector<8x32xf32>
    %236 = arith.addf %210, %235 : vector<8x32xf32>
    %c4_94 = arith.constant 4 : index
    %c0_95 = arith.constant 0 : index
    %c0_96 = arith.constant 0 : index
    %237 = vector.load %arg8[%c4_94, %c0_95, %c0_96] : memref<14x8x128xf32, #tpu.memory_space<vmem>>, vector<1x8x128xf32>
    %238 = vector.shape_cast %237 : vector<1x8x128xf32> to vector<8x128xf32>
    %cst_97 = arith.constant dense<0.000000e+00> : vector<8x128xf32>
    %239 = tpu.matmul %232, %1, %cst_97 {dimension_numbers = #tpu.dot_dimension_numbers<[1], [0], [0], [1], [0, 0, 1, 1], [], []>} : vector<8x32xf32>, vector<32x128xf32>, vector<8x128xf32> -> vector<8x128xf32>
    %240 = arith.addf %238, %239 : vector<8x128xf32>
    %241 = arith.negf %240 : vector<8x128xf32>
    %242 = math.exp %241 : vector<8x128xf32>
    %cst_98 = arith.constant 1.000000e+00 : f32
    %243 = vector.broadcast %cst_98 : f32 to vector<8x128xf32>
    %244 = arith.addf %243, %242 : vector<8x128xf32>
    %245 = arith.divf %243, %244 : vector<8x128xf32>
    %246 = vector.extract_strided_slice %245 {offsets = [0, 0], sizes = [8, 32], strides = [1, 1]} : vector<8x128xf32> to vector<8x32xf32>
    %247 = vector.extract_strided_slice %245 {offsets = [0, 32], sizes = [8, 32], strides = [1, 1]} : vector<8x128xf32> to vector<8x32xf32>
    %248 = vector.extract_strided_slice %245 {offsets = [0, 64], sizes = [8, 32], strides = [1, 1]} : vector<8x128xf32> to vector<8x32xf32>
    %cst_99 = arith.constant 2.000000e+00 : f32
    %249 = vector.broadcast %cst_99 : f32 to vector<8x32xf32>
    %250 = arith.mulf %249, %248 : vector<8x32xf32>
    %cst_100 = arith.constant 1.000000e+00 : f32
    %251 = vector.broadcast %cst_100 : f32 to vector<8x32xf32>
    %252 = arith.subf %250, %251 : vector<8x32xf32>
    %253 = vector.extract_strided_slice %245 {offsets = [0, 96], sizes = [8, 32], strides = [1, 1]} : vector<8x128xf32> to vector<8x32xf32>
    %254 = arith.mulf %247, %230 : vector<8x32xf32>
    %255 = arith.mulf %246, %252 : vector<8x32xf32>
    %256 = arith.addf %254, %255 : vector<8x32xf32>
    %257 = math.tanh %256 : vector<8x32xf32>
    %258 = arith.mulf %253, %257 : vector<8x32xf32>
    %259 = vector.extract_strided_slice %3 {offsets = [4, 0], sizes = [1, 32], strides = [1, 1]} : vector<14x32xf32> to vector<1x32xf32>
    %260 = vector.broadcast %259 : vector<1x32xf32> to vector<8x32xf32>
    %261 = arith.mulf %258, %260 : vector<8x32xf32>
    %262 = arith.addf %236, %261 : vector<8x32xf32>
    %c5_101 = arith.constant 5 : index
    %c0_102 = arith.constant 0 : index
    %c0_103 = arith.constant 0 : index
    %263 = vector.load %arg8[%c5_101, %c0_102, %c0_103] : memref<14x8x128xf32, #tpu.memory_space<vmem>>, vector<1x8x128xf32>
    %264 = vector.shape_cast %263 : vector<1x8x128xf32> to vector<8x128xf32>
    %cst_104 = arith.constant dense<0.000000e+00> : vector<8x128xf32>
    %265 = tpu.matmul %258, %1, %cst_104 {dimension_numbers = #tpu.dot_dimension_numbers<[1], [0], [0], [1], [0, 0, 1, 1], [], []>} : vector<8x32xf32>, vector<32x128xf32>, vector<8x128xf32> -> vector<8x128xf32>
    %266 = arith.addf %264, %265 : vector<8x128xf32>
    %267 = arith.negf %266 : vector<8x128xf32>
    %268 = math.exp %267 : vector<8x128xf32>
    %cst_105 = arith.constant 1.000000e+00 : f32
    %269 = vector.broadcast %cst_105 : f32 to vector<8x128xf32>
    %270 = arith.addf %269, %268 : vector<8x128xf32>
    %271 = arith.divf %269, %270 : vector<8x128xf32>
    %272 = vector.extract_strided_slice %271 {offsets = [0, 0], sizes = [8, 32], strides = [1, 1]} : vector<8x128xf32> to vector<8x32xf32>
    %273 = vector.extract_strided_slice %271 {offsets = [0, 32], sizes = [8, 32], strides = [1, 1]} : vector<8x128xf32> to vector<8x32xf32>
    %274 = vector.extract_strided_slice %271 {offsets = [0, 64], sizes = [8, 32], strides = [1, 1]} : vector<8x128xf32> to vector<8x32xf32>
    %cst_106 = arith.constant 2.000000e+00 : f32
    %275 = vector.broadcast %cst_106 : f32 to vector<8x32xf32>
    %276 = arith.mulf %275, %274 : vector<8x32xf32>
    %cst_107 = arith.constant 1.000000e+00 : f32
    %277 = vector.broadcast %cst_107 : f32 to vector<8x32xf32>
    %278 = arith.subf %276, %277 : vector<8x32xf32>
    %279 = vector.extract_strided_slice %271 {offsets = [0, 96], sizes = [8, 32], strides = [1, 1]} : vector<8x128xf32> to vector<8x32xf32>
    %280 = arith.mulf %273, %256 : vector<8x32xf32>
    %281 = arith.mulf %272, %278 : vector<8x32xf32>
    %282 = arith.addf %280, %281 : vector<8x32xf32>
    %283 = math.tanh %282 : vector<8x32xf32>
    %284 = arith.mulf %279, %283 : vector<8x32xf32>
    %285 = vector.extract_strided_slice %3 {offsets = [5, 0], sizes = [1, 32], strides = [1, 1]} : vector<14x32xf32> to vector<1x32xf32>
    %286 = vector.broadcast %285 : vector<1x32xf32> to vector<8x32xf32>
    %287 = arith.mulf %284, %286 : vector<8x32xf32>
    %288 = arith.addf %262, %287 : vector<8x32xf32>
    %c6_108 = arith.constant 6 : index
    %c0_109 = arith.constant 0 : index
    %c0_110 = arith.constant 0 : index
    %289 = vector.load %arg8[%c6_108, %c0_109, %c0_110] : memref<14x8x128xf32, #tpu.memory_space<vmem>>, vector<1x8x128xf32>
    %290 = vector.shape_cast %289 : vector<1x8x128xf32> to vector<8x128xf32>
    %cst_111 = arith.constant dense<0.000000e+00> : vector<8x128xf32>
    %291 = tpu.matmul %284, %1, %cst_111 {dimension_numbers = #tpu.dot_dimension_numbers<[1], [0], [0], [1], [0, 0, 1, 1], [], []>} : vector<8x32xf32>, vector<32x128xf32>, vector<8x128xf32> -> vector<8x128xf32>
    %292 = arith.addf %290, %291 : vector<8x128xf32>
    %293 = arith.negf %292 : vector<8x128xf32>
    %294 = math.exp %293 : vector<8x128xf32>
    %cst_112 = arith.constant 1.000000e+00 : f32
    %295 = vector.broadcast %cst_112 : f32 to vector<8x128xf32>
    %296 = arith.addf %295, %294 : vector<8x128xf32>
    %297 = arith.divf %295, %296 : vector<8x128xf32>
    %298 = vector.extract_strided_slice %297 {offsets = [0, 0], sizes = [8, 32], strides = [1, 1]} : vector<8x128xf32> to vector<8x32xf32>
    %299 = vector.extract_strided_slice %297 {offsets = [0, 32], sizes = [8, 32], strides = [1, 1]} : vector<8x128xf32> to vector<8x32xf32>
    %300 = vector.extract_strided_slice %297 {offsets = [0, 64], sizes = [8, 32], strides = [1, 1]} : vector<8x128xf32> to vector<8x32xf32>
    %cst_113 = arith.constant 2.000000e+00 : f32
    %301 = vector.broadcast %cst_113 : f32 to vector<8x32xf32>
    %302 = arith.mulf %301, %300 : vector<8x32xf32>
    %cst_114 = arith.constant 1.000000e+00 : f32
    %303 = vector.broadcast %cst_114 : f32 to vector<8x32xf32>
    %304 = arith.subf %302, %303 : vector<8x32xf32>
    %305 = vector.extract_strided_slice %297 {offsets = [0, 96], sizes = [8, 32], strides = [1, 1]} : vector<8x128xf32> to vector<8x32xf32>
    %306 = arith.mulf %299, %282 : vector<8x32xf32>
    %307 = arith.mulf %298, %304 : vector<8x32xf32>
    %308 = arith.addf %306, %307 : vector<8x32xf32>
    %309 = math.tanh %308 : vector<8x32xf32>
    %310 = arith.mulf %305, %309 : vector<8x32xf32>
    %311 = vector.extract_strided_slice %3 {offsets = [6, 0], sizes = [1, 32], strides = [1, 1]} : vector<14x32xf32> to vector<1x32xf32>
    %312 = vector.broadcast %311 : vector<1x32xf32> to vector<8x32xf32>
    %313 = arith.mulf %310, %312 : vector<8x32xf32>
    %314 = arith.addf %288, %313 : vector<8x32xf32>
    %c7_115 = arith.constant 7 : index
    %c0_116 = arith.constant 0 : index
    %c0_117 = arith.constant 0 : index
    %315 = vector.load %arg8[%c7_115, %c0_116, %c0_117] : memref<14x8x128xf32, #tpu.memory_space<vmem>>, vector<1x8x128xf32>
    %316 = vector.shape_cast %315 : vector<1x8x128xf32> to vector<8x128xf32>
    %cst_118 = arith.constant dense<0.000000e+00> : vector<8x128xf32>
    %317 = tpu.matmul %310, %1, %cst_118 {dimension_numbers = #tpu.dot_dimension_numbers<[1], [0], [0], [1], [0, 0, 1, 1], [], []>} : vector<8x32xf32>, vector<32x128xf32>, vector<8x128xf32> -> vector<8x128xf32>
    %318 = arith.addf %316, %317 : vector<8x128xf32>
    %319 = arith.negf %318 : vector<8x128xf32>
    %320 = math.exp %319 : vector<8x128xf32>
    %cst_119 = arith.constant 1.000000e+00 : f32
    %321 = vector.broadcast %cst_119 : f32 to vector<8x128xf32>
    %322 = arith.addf %321, %320 : vector<8x128xf32>
    %323 = arith.divf %321, %322 : vector<8x128xf32>
    %324 = vector.extract_strided_slice %323 {offsets = [0, 0], sizes = [8, 32], strides = [1, 1]} : vector<8x128xf32> to vector<8x32xf32>
    %325 = vector.extract_strided_slice %323 {offsets = [0, 32], sizes = [8, 32], strides = [1, 1]} : vector<8x128xf32> to vector<8x32xf32>
    %326 = vector.extract_strided_slice %323 {offsets = [0, 64], sizes = [8, 32], strides = [1, 1]} : vector<8x128xf32> to vector<8x32xf32>
    %cst_120 = arith.constant 2.000000e+00 : f32
    %327 = vector.broadcast %cst_120 : f32 to vector<8x32xf32>
    %328 = arith.mulf %327, %326 : vector<8x32xf32>
    %cst_121 = arith.constant 1.000000e+00 : f32
    %329 = vector.broadcast %cst_121 : f32 to vector<8x32xf32>
    %330 = arith.subf %328, %329 : vector<8x32xf32>
    %331 = vector.extract_strided_slice %323 {offsets = [0, 96], sizes = [8, 32], strides = [1, 1]} : vector<8x128xf32> to vector<8x32xf32>
    %332 = arith.mulf %325, %308 : vector<8x32xf32>
    %333 = arith.mulf %324, %330 : vector<8x32xf32>
    %334 = arith.addf %332, %333 : vector<8x32xf32>
    %335 = math.tanh %334 : vector<8x32xf32>
    %336 = arith.mulf %331, %335 : vector<8x32xf32>
    %337 = vector.extract_strided_slice %3 {offsets = [7, 0], sizes = [1, 32], strides = [1, 1]} : vector<14x32xf32> to vector<1x32xf32>
    %338 = vector.broadcast %337 : vector<1x32xf32> to vector<8x32xf32>
    %339 = arith.mulf %336, %338 : vector<8x32xf32>
    %340 = arith.addf %314, %339 : vector<8x32xf32>
    %c8_122 = arith.constant 8 : index
    %c0_123 = arith.constant 0 : index
    %c0_124 = arith.constant 0 : index
    %341 = vector.load %arg8[%c8_122, %c0_123, %c0_124] : memref<14x8x128xf32, #tpu.memory_space<vmem>>, vector<1x8x128xf32>
    %342 = vector.shape_cast %341 : vector<1x8x128xf32> to vector<8x128xf32>
    %cst_125 = arith.constant dense<0.000000e+00> : vector<8x128xf32>
    %343 = tpu.matmul %336, %1, %cst_125 {dimension_numbers = #tpu.dot_dimension_numbers<[1], [0], [0], [1], [0, 0, 1, 1], [], []>} : vector<8x32xf32>, vector<32x128xf32>, vector<8x128xf32> -> vector<8x128xf32>
    %344 = arith.addf %342, %343 : vector<8x128xf32>
    %345 = arith.negf %344 : vector<8x128xf32>
    %346 = math.exp %345 : vector<8x128xf32>
    %cst_126 = arith.constant 1.000000e+00 : f32
    %347 = vector.broadcast %cst_126 : f32 to vector<8x128xf32>
    %348 = arith.addf %347, %346 : vector<8x128xf32>
    %349 = arith.divf %347, %348 : vector<8x128xf32>
    %350 = vector.extract_strided_slice %349 {offsets = [0, 0], sizes = [8, 32], strides = [1, 1]} : vector<8x128xf32> to vector<8x32xf32>
    %351 = vector.extract_strided_slice %349 {offsets = [0, 32], sizes = [8, 32], strides = [1, 1]} : vector<8x128xf32> to vector<8x32xf32>
    %352 = vector.extract_strided_slice %349 {offsets = [0, 64], sizes = [8, 32], strides = [1, 1]} : vector<8x128xf32> to vector<8x32xf32>
    %cst_127 = arith.constant 2.000000e+00 : f32
    %353 = vector.broadcast %cst_127 : f32 to vector<8x32xf32>
    %354 = arith.mulf %353, %352 : vector<8x32xf32>
    %cst_128 = arith.constant 1.000000e+00 : f32
    %355 = vector.broadcast %cst_128 : f32 to vector<8x32xf32>
    %356 = arith.subf %354, %355 : vector<8x32xf32>
    %357 = vector.extract_strided_slice %349 {offsets = [0, 96], sizes = [8, 32], strides = [1, 1]} : vector<8x128xf32> to vector<8x32xf32>
    %358 = arith.mulf %351, %334 : vector<8x32xf32>
    %359 = arith.mulf %350, %356 : vector<8x32xf32>
    %360 = arith.addf %358, %359 : vector<8x32xf32>
    %361 = math.tanh %360 : vector<8x32xf32>
    %362 = arith.mulf %357, %361 : vector<8x32xf32>
    %363 = vector.extract_strided_slice %3 {offsets = [8, 0], sizes = [1, 32], strides = [1, 1]} : vector<14x32xf32> to vector<1x32xf32>
    %364 = vector.broadcast %363 : vector<1x32xf32> to vector<8x32xf32>
    %365 = arith.mulf %362, %364 : vector<8x32xf32>
    %366 = arith.addf %340, %365 : vector<8x32xf32>
    %c9_129 = arith.constant 9 : index
    %c0_130 = arith.constant 0 : index
    %c0_131 = arith.constant 0 : index
    %367 = vector.load %arg8[%c9_129, %c0_130, %c0_131] : memref<14x8x128xf32, #tpu.memory_space<vmem>>, vector<1x8x128xf32>
    %368 = vector.shape_cast %367 : vector<1x8x128xf32> to vector<8x128xf32>
    %cst_132 = arith.constant dense<0.000000e+00> : vector<8x128xf32>
    %369 = tpu.matmul %362, %1, %cst_132 {dimension_numbers = #tpu.dot_dimension_numbers<[1], [0], [0], [1], [0, 0, 1, 1], [], []>} : vector<8x32xf32>, vector<32x128xf32>, vector<8x128xf32> -> vector<8x128xf32>
    %370 = arith.addf %368, %369 : vector<8x128xf32>
    %371 = arith.negf %370 : vector<8x128xf32>
    %372 = math.exp %371 : vector<8x128xf32>
    %cst_133 = arith.constant 1.000000e+00 : f32
    %373 = vector.broadcast %cst_133 : f32 to vector<8x128xf32>
    %374 = arith.addf %373, %372 : vector<8x128xf32>
    %375 = arith.divf %373, %374 : vector<8x128xf32>
    %376 = vector.extract_strided_slice %375 {offsets = [0, 0], sizes = [8, 32], strides = [1, 1]} : vector<8x128xf32> to vector<8x32xf32>
    %377 = vector.extract_strided_slice %375 {offsets = [0, 32], sizes = [8, 32], strides = [1, 1]} : vector<8x128xf32> to vector<8x32xf32>
    %378 = vector.extract_strided_slice %375 {offsets = [0, 64], sizes = [8, 32], strides = [1, 1]} : vector<8x128xf32> to vector<8x32xf32>
    %cst_134 = arith.constant 2.000000e+00 : f32
    %379 = vector.broadcast %cst_134 : f32 to vector<8x32xf32>
    %380 = arith.mulf %379, %378 : vector<8x32xf32>
    %cst_135 = arith.constant 1.000000e+00 : f32
    %381 = vector.broadcast %cst_135 : f32 to vector<8x32xf32>
    %382 = arith.subf %380, %381 : vector<8x32xf32>
    %383 = vector.extract_strided_slice %375 {offsets = [0, 96], sizes = [8, 32], strides = [1, 1]} : vector<8x128xf32> to vector<8x32xf32>
    %384 = arith.mulf %377, %360 : vector<8x32xf32>
    %385 = arith.mulf %376, %382 : vector<8x32xf32>
    %386 = arith.addf %384, %385 : vector<8x32xf32>
    %387 = math.tanh %386 : vector<8x32xf32>
    %388 = arith.mulf %383, %387 : vector<8x32xf32>
    %389 = vector.extract_strided_slice %3 {offsets = [9, 0], sizes = [1, 32], strides = [1, 1]} : vector<14x32xf32> to vector<1x32xf32>
    %390 = vector.broadcast %389 : vector<1x32xf32> to vector<8x32xf32>
    %391 = arith.mulf %388, %390 : vector<8x32xf32>
    %392 = arith.addf %366, %391 : vector<8x32xf32>
    %c10_136 = arith.constant 10 : index
    %c0_137 = arith.constant 0 : index
    %c0_138 = arith.constant 0 : index
    %393 = vector.load %arg8[%c10_136, %c0_137, %c0_138] : memref<14x8x128xf32, #tpu.memory_space<vmem>>, vector<1x8x128xf32>
    %394 = vector.shape_cast %393 : vector<1x8x128xf32> to vector<8x128xf32>
    %cst_139 = arith.constant dense<0.000000e+00> : vector<8x128xf32>
    %395 = tpu.matmul %388, %1, %cst_139 {dimension_numbers = #tpu.dot_dimension_numbers<[1], [0], [0], [1], [0, 0, 1, 1], [], []>} : vector<8x32xf32>, vector<32x128xf32>, vector<8x128xf32> -> vector<8x128xf32>
    %396 = arith.addf %394, %395 : vector<8x128xf32>
    %397 = arith.negf %396 : vector<8x128xf32>
    %398 = math.exp %397 : vector<8x128xf32>
    %cst_140 = arith.constant 1.000000e+00 : f32
    %399 = vector.broadcast %cst_140 : f32 to vector<8x128xf32>
    %400 = arith.addf %399, %398 : vector<8x128xf32>
    %401 = arith.divf %399, %400 : vector<8x128xf32>
    %402 = vector.extract_strided_slice %401 {offsets = [0, 0], sizes = [8, 32], strides = [1, 1]} : vector<8x128xf32> to vector<8x32xf32>
    %403 = vector.extract_strided_slice %401 {offsets = [0, 32], sizes = [8, 32], strides = [1, 1]} : vector<8x128xf32> to vector<8x32xf32>
    %404 = vector.extract_strided_slice %401 {offsets = [0, 64], sizes = [8, 32], strides = [1, 1]} : vector<8x128xf32> to vector<8x32xf32>
    %cst_141 = arith.constant 2.000000e+00 : f32
    %405 = vector.broadcast %cst_141 : f32 to vector<8x32xf32>
    %406 = arith.mulf %405, %404 : vector<8x32xf32>
    %cst_142 = arith.constant 1.000000e+00 : f32
    %407 = vector.broadcast %cst_142 : f32 to vector<8x32xf32>
    %408 = arith.subf %406, %407 : vector<8x32xf32>
    %409 = vector.extract_strided_slice %401 {offsets = [0, 96], sizes = [8, 32], strides = [1, 1]} : vector<8x128xf32> to vector<8x32xf32>
    %410 = arith.mulf %403, %386 : vector<8x32xf32>
    %411 = arith.mulf %402, %408 : vector<8x32xf32>
    %412 = arith.addf %410, %411 : vector<8x32xf32>
    %413 = math.tanh %412 : vector<8x32xf32>
    %414 = arith.mulf %409, %413 : vector<8x32xf32>
    %415 = vector.extract_strided_slice %3 {offsets = [10, 0], sizes = [1, 32], strides = [1, 1]} : vector<14x32xf32> to vector<1x32xf32>
    %416 = vector.broadcast %415 : vector<1x32xf32> to vector<8x32xf32>
    %417 = arith.mulf %414, %416 : vector<8x32xf32>
    %418 = arith.addf %392, %417 : vector<8x32xf32>
    %c11_143 = arith.constant 11 : index
    %c0_144 = arith.constant 0 : index
    %c0_145 = arith.constant 0 : index
    %419 = vector.load %arg8[%c11_143, %c0_144, %c0_145] : memref<14x8x128xf32, #tpu.memory_space<vmem>>, vector<1x8x128xf32>
    %420 = vector.shape_cast %419 : vector<1x8x128xf32> to vector<8x128xf32>
    %cst_146 = arith.constant dense<0.000000e+00> : vector<8x128xf32>
    %421 = tpu.matmul %414, %1, %cst_146 {dimension_numbers = #tpu.dot_dimension_numbers<[1], [0], [0], [1], [0, 0, 1, 1], [], []>} : vector<8x32xf32>, vector<32x128xf32>, vector<8x128xf32> -> vector<8x128xf32>
    %422 = arith.addf %420, %421 : vector<8x128xf32>
    %423 = arith.negf %422 : vector<8x128xf32>
    %424 = math.exp %423 : vector<8x128xf32>
    %cst_147 = arith.constant 1.000000e+00 : f32
    %425 = vector.broadcast %cst_147 : f32 to vector<8x128xf32>
    %426 = arith.addf %425, %424 : vector<8x128xf32>
    %427 = arith.divf %425, %426 : vector<8x128xf32>
    %428 = vector.extract_strided_slice %427 {offsets = [0, 0], sizes = [8, 32], strides = [1, 1]} : vector<8x128xf32> to vector<8x32xf32>
    %429 = vector.extract_strided_slice %427 {offsets = [0, 32], sizes = [8, 32], strides = [1, 1]} : vector<8x128xf32> to vector<8x32xf32>
    %430 = vector.extract_strided_slice %427 {offsets = [0, 64], sizes = [8, 32], strides = [1, 1]} : vector<8x128xf32> to vector<8x32xf32>
    %cst_148 = arith.constant 2.000000e+00 : f32
    %431 = vector.broadcast %cst_148 : f32 to vector<8x32xf32>
    %432 = arith.mulf %431, %430 : vector<8x32xf32>
    %cst_149 = arith.constant 1.000000e+00 : f32
    %433 = vector.broadcast %cst_149 : f32 to vector<8x32xf32>
    %434 = arith.subf %432, %433 : vector<8x32xf32>
    %435 = vector.extract_strided_slice %427 {offsets = [0, 96], sizes = [8, 32], strides = [1, 1]} : vector<8x128xf32> to vector<8x32xf32>
    %436 = arith.mulf %429, %412 : vector<8x32xf32>
    %437 = arith.mulf %428, %434 : vector<8x32xf32>
    %438 = arith.addf %436, %437 : vector<8x32xf32>
    %439 = math.tanh %438 : vector<8x32xf32>
    %440 = arith.mulf %435, %439 : vector<8x32xf32>
    %441 = vector.extract_strided_slice %3 {offsets = [11, 0], sizes = [1, 32], strides = [1, 1]} : vector<14x32xf32> to vector<1x32xf32>
    %442 = vector.broadcast %441 : vector<1x32xf32> to vector<8x32xf32>
    %443 = arith.mulf %440, %442 : vector<8x32xf32>
    %444 = arith.addf %418, %443 : vector<8x32xf32>
    %c12_150 = arith.constant 12 : index
    %c0_151 = arith.constant 0 : index
    %c0_152 = arith.constant 0 : index
    %445 = vector.load %arg8[%c12_150, %c0_151, %c0_152] : memref<14x8x128xf32, #tpu.memory_space<vmem>>, vector<1x8x128xf32>
    %446 = vector.shape_cast %445 : vector<1x8x128xf32> to vector<8x128xf32>
    %cst_153 = arith.constant dense<0.000000e+00> : vector<8x128xf32>
    %447 = tpu.matmul %440, %1, %cst_153 {dimension_numbers = #tpu.dot_dimension_numbers<[1], [0], [0], [1], [0, 0, 1, 1], [], []>} : vector<8x32xf32>, vector<32x128xf32>, vector<8x128xf32> -> vector<8x128xf32>
    %448 = arith.addf %446, %447 : vector<8x128xf32>
    %449 = arith.negf %448 : vector<8x128xf32>
    %450 = math.exp %449 : vector<8x128xf32>
    %cst_154 = arith.constant 1.000000e+00 : f32
    %451 = vector.broadcast %cst_154 : f32 to vector<8x128xf32>
    %452 = arith.addf %451, %450 : vector<8x128xf32>
    %453 = arith.divf %451, %452 : vector<8x128xf32>
    %454 = vector.extract_strided_slice %453 {offsets = [0, 0], sizes = [8, 32], strides = [1, 1]} : vector<8x128xf32> to vector<8x32xf32>
    %455 = vector.extract_strided_slice %453 {offsets = [0, 32], sizes = [8, 32], strides = [1, 1]} : vector<8x128xf32> to vector<8x32xf32>
    %456 = vector.extract_strided_slice %453 {offsets = [0, 64], sizes = [8, 32], strides = [1, 1]} : vector<8x128xf32> to vector<8x32xf32>
    %cst_155 = arith.constant 2.000000e+00 : f32
    %457 = vector.broadcast %cst_155 : f32 to vector<8x32xf32>
    %458 = arith.mulf %457, %456 : vector<8x32xf32>
    %cst_156 = arith.constant 1.000000e+00 : f32
    %459 = vector.broadcast %cst_156 : f32 to vector<8x32xf32>
    %460 = arith.subf %458, %459 : vector<8x32xf32>
    %461 = vector.extract_strided_slice %453 {offsets = [0, 96], sizes = [8, 32], strides = [1, 1]} : vector<8x128xf32> to vector<8x32xf32>
    %462 = arith.mulf %455, %438 : vector<8x32xf32>
    %463 = arith.mulf %454, %460 : vector<8x32xf32>
    %464 = arith.addf %462, %463 : vector<8x32xf32>
    %465 = math.tanh %464 : vector<8x32xf32>
    %466 = arith.mulf %461, %465 : vector<8x32xf32>
    %467 = vector.extract_strided_slice %3 {offsets = [12, 0], sizes = [1, 32], strides = [1, 1]} : vector<14x32xf32> to vector<1x32xf32>
    %468 = vector.broadcast %467 : vector<1x32xf32> to vector<8x32xf32>
    %469 = arith.mulf %466, %468 : vector<8x32xf32>
    %470 = arith.addf %444, %469 : vector<8x32xf32>
    %c13_157 = arith.constant 13 : index
    %c0_158 = arith.constant 0 : index
    %c0_159 = arith.constant 0 : index
    %471 = vector.load %arg8[%c13_157, %c0_158, %c0_159] : memref<14x8x128xf32, #tpu.memory_space<vmem>>, vector<1x8x128xf32>
    %472 = vector.shape_cast %471 : vector<1x8x128xf32> to vector<8x128xf32>
    %cst_160 = arith.constant dense<0.000000e+00> : vector<8x128xf32>
    %473 = tpu.matmul %466, %1, %cst_160 {dimension_numbers = #tpu.dot_dimension_numbers<[1], [0], [0], [1], [0, 0, 1, 1], [], []>} : vector<8x32xf32>, vector<32x128xf32>, vector<8x128xf32> -> vector<8x128xf32>
    %474 = arith.addf %472, %473 : vector<8x128xf32>
    %475 = arith.negf %474 : vector<8x128xf32>
    %476 = math.exp %475 : vector<8x128xf32>
    %cst_161 = arith.constant 1.000000e+00 : f32
    %477 = vector.broadcast %cst_161 : f32 to vector<8x128xf32>
    %478 = arith.addf %477, %476 : vector<8x128xf32>
    %479 = arith.divf %477, %478 : vector<8x128xf32>
    %480 = vector.extract_strided_slice %479 {offsets = [0, 0], sizes = [8, 32], strides = [1, 1]} : vector<8x128xf32> to vector<8x32xf32>
    %481 = vector.extract_strided_slice %479 {offsets = [0, 32], sizes = [8, 32], strides = [1, 1]} : vector<8x128xf32> to vector<8x32xf32>
    %482 = vector.extract_strided_slice %479 {offsets = [0, 64], sizes = [8, 32], strides = [1, 1]} : vector<8x128xf32> to vector<8x32xf32>
    %cst_162 = arith.constant 2.000000e+00 : f32
    %483 = vector.broadcast %cst_162 : f32 to vector<8x32xf32>
    %484 = arith.mulf %483, %482 : vector<8x32xf32>
    %cst_163 = arith.constant 1.000000e+00 : f32
    %485 = vector.broadcast %cst_163 : f32 to vector<8x32xf32>
    %486 = arith.subf %484, %485 : vector<8x32xf32>
    %487 = vector.extract_strided_slice %479 {offsets = [0, 96], sizes = [8, 32], strides = [1, 1]} : vector<8x128xf32> to vector<8x32xf32>
    %488 = arith.mulf %481, %464 : vector<8x32xf32>
    %489 = arith.mulf %480, %486 : vector<8x32xf32>
    %490 = arith.addf %488, %489 : vector<8x32xf32>
    %491 = math.tanh %490 : vector<8x32xf32>
    %492 = arith.mulf %487, %491 : vector<8x32xf32>
    %493 = vector.extract_strided_slice %3 {offsets = [13, 0], sizes = [1, 32], strides = [1, 1]} : vector<14x32xf32> to vector<1x32xf32>
    %494 = vector.broadcast %493 : vector<1x32xf32> to vector<8x32xf32>
    %495 = arith.mulf %492, %494 : vector<8x32xf32>
    %496 = arith.addf %470, %495 : vector<8x32xf32>
    %cst_164 = arith.constant dense<0.000000e+00> : vector<8xf32>
    %497 = vector.multi_reduction <add>, %496, %cst_164 [1] : vector<8x32xf32> to vector<8xf32>
    %498 = vector.shape_cast %497 : vector<8xf32> to vector<8x1xf32>
    %c0_165 = arith.constant 0 : index
    %c0_166 = arith.constant 0 : index
    %499 = memref.load %arg6[%c0_165, %c0_166] : memref<1x1xf32, #tpu.memory_space<smem>>
    %500 = vector.broadcast %499 : f32 to vector<8x1xf32>
    %501 = arith.addf %498, %500 : vector<8x1xf32>
    %c0_167 = arith.constant 0 : index
    %c0_168 = arith.constant 0 : index
    %502 = vector.load %arg7[%c0_167, %c0_168] : memref<8x1xf32, #tpu.memory_space<vmem>>, vector<8x1xf32>
    tpu.vector_store %arg7[%c0_167, %c0_168], %501 {strides = array<i32>} : memref<8x1xf32, #tpu.memory_space<vmem>>, vector<8x1xf32>,
    return
  }
  func.func @transform_0(%arg0: i32) -> (i32, i32) {
    %c0_i32 = arith.constant 0 : i32
    %c0_i32_0 = arith.constant 0 : i32
    return %arg0, %c0_i32 : i32, i32
  }
  func.func @transform_1(%arg0: i32) -> (i32, i32) {
    %c0_i32 = arith.constant 0 : i32
    %c0_i32_0 = arith.constant 0 : i32
    %c0_i32_1 = arith.constant 0 : i32
    return %c0_i32, %c0_i32_0 : i32, i32
  }
  func.func @transform_2(%arg0: i32) -> (i32, i32) {
    %c0_i32 = arith.constant 0 : i32
    %c0_i32_0 = arith.constant 0 : i32
    %c0_i32_1 = arith.constant 0 : i32
    return %c0_i32, %c0_i32_0 : i32, i32
  }
  func.func @transform_3(%arg0: i32) -> (i32, i32) {
    %c0_i32 = arith.constant 0 : i32
    %c0_i32_0 = arith.constant 0 : i32
    %c0_i32_1 = arith.constant 0 : i32
    return %c0_i32, %c0_i32_0 : i32, i32
  }
  func.func @transform_4(%arg0: i32) -> (i32, i32) {
    %c0_i32 = arith.constant 0 : i32
    %c0_i32_0 = arith.constant 0 : i32
    %c0_i32_1 = arith.constant 0 : i32
    return %c0_i32, %c0_i32_0 : i32, i32
  }
  func.func @transform_5(%arg0: i32) -> (i32, i32) {
    %c0_i32 = arith.constant 0 : i32
    %c0_i32_0 = arith.constant 0 : i32
    %c0_i32_1 = arith.constant 0 : i32
    return %c0_i32, %c0_i32_0 : i32, i32
  }
  func.func @transform_6(%arg0: i32) -> (i32, i32) {
    %c0_i32 = arith.constant 0 : i32
    %c0_i32_0 = arith.constant 0 : i32
    return %arg0, %c0_i32 : i32, i32
  }
}

</mosaic_0001>

<bundles_post_ra>
// kernel: tpu_custom_call.1
= control target key start
LH: loop header
LB: loop body
LE: loop exit
PB: predicated region body
PF: predicated region fallthrough
CT: control target
= control target key end

     0   :  { %12 = vsyncpa [#allocation5], 0  ;;  %s2716_s0 = inlined_call_operand.hbm [shape: f32[8,14], index: 0, kind: input, shape index: {}]   ;;  %s2717_s1 = inlined_call_operand.vmem [shape: f32[1,128], index: 1, kind: input, shape index: {}]   ;;  %s2718_s2 = inlined_call_operand.hbm [shape: f32[32,128], index: 2, kind: input, shape index: {}]   ;;  %s2719_s3 = inlined_call_operand.vmem [shape: f32[1,128], index: 3, kind: input, shape index: {}]   ;;  %s2720_s4 = inlined_call_operand.vmem [shape: f32[14,32], index: 4, kind: input, shape index: {}]   ;;  %s2721_s5 = inlined_call_operand.<no memory space> [shape: f32[1,1], index: 5, kind: input, shape index: {}]   ;;  %s2722_s6 = inlined_call_operand.vmem [shape: f32[8,1], index: 6, kind: output, shape index: {}]  }
   0x1   :  { %13 = vsyncpa [#allocation7], 0  ;;  %s2315_s21 = smov [#allocation4]   ;;  %s2316_s23 = smov [#allocation6]  }
   0x2   :  { %s20_s22 = sshll.u32 %s2315_s21, 4  ;;  %s31_s24 = sshll.u32 %s2316_s23, 4  ;;  %s21_s22 = int_to_ptr.vmem [resolvable:$true] %s20_s22  ;;  %s2374_s24 = int_to_ptr.vmem [resolvable:$true] %s31_s24 }
   0x3   :  { %s2267_s27 = scalar_lea.hbm %s2716_s0, 128 }
   0x4   :  { %p2268_p0 = scmp.ne.s32.totalorder %s2716_s0, %s2267_s27  ;;  %p2271_p1 = scmp.lt.u32.totalorder %s2267_s27, %s2716_s0 }
   0x6   :  { %p2273_p2 = pnand %p2271_p1, %p2268_p0 }
   0x8   :  { %2276 = shalt.err (!%p2273_p2)
}
   0x9   :  { %s2277_s8 = scalar_lea.vmem %s21_s22, 128  ;;  %p2282_p4 = scmp.lt.s32.totalorder %s21_s22, %s21_s22 }
   0xa   :  { %p2278_p3 = scmp.ne.s32.totalorder %s21_s22, %s2277_s8  ;;  %p2283_p5 = scmp.lt.s32.totalorder %s2277_s8, %s2277_s8 }
   0xc   :  { %p2284_p6 = por %p2283_p5, %p2282_p4 }
   0xe   :  { %p2285_p7 = pnand %p2284_p6, %p2278_p3 }
  0x10   :  { %2288 = shalt.err (!%p2285_p7)
}
  0x11   :  { %23 = dma.hbm_to_vmem [thread:$0]  %s2716_s0, 128, %s21_s22, [#allocation5]  }
  0x12   :  { %s2289_s13 = scalar_lea.hbm %s2718_s2, 512 }
  0x13   :  { %p2290_p8 = scmp.ne.s32.totalorder %s2718_s2, %s2289_s13  ;;  %p2293_p9 = scmp.lt.u32.totalorder %s2289_s13, %s2718_s2 }
  0x15   :  { %p2295_p10 = pnand %p2293_p9, %p2290_p8 }
  0x17   :  { %2298 = shalt.err (!%p2295_p10)
}
  0x18   :  { %s2299_s18 = scalar_lea.vmem %s2374_s24, 512  ;;  %p2304_p12 = scmp.lt.s32.totalorder %s2374_s24, %s2374_s24 }
  0x19   :  { %p2300_p11 = scmp.ne.s32.totalorder %s2374_s24, %s2299_s18  ;;  %p2305_p13 = scmp.lt.s32.totalorder %s2299_s18, %s2299_s18 }
  0x1b   :  { %p2306_p0 = por %p2305_p13, %p2304_p12 }
  0x1d   :  { %p2307_p1 = pnand %p2306_p0, %p2300_p11 }
  0x1f   :  { %2310 = shalt.err (!%p2307_p1)
}
  0x20   :  { %s2317_s0 = smov 128   ;;  %s2318_s19 = smov 8  }
  0x21   :  { %37 = dma.hbm_to_vmem [thread:$0]  %s2718_s2, 512, %s2374_s24, [#allocation7], %s2317_s0, %s2317_s0, %s2318_s19  }
  0x22   :  { %2311 = dma.done.wait [#allocation5], 128  }
  0x23   :  { %2312 = vsyncadd [#allocation5], 4294967168 }
  0x24   :  { %2313 = dma.done.wait [#allocation7], 512  }
  0x25   :  { %2314 = vsyncadd [#allocation7], 4294966784  ;;  %v2319_v0 = vmov 0.0|0.0   ;;  %vm2320_vm0 = vmmov 0   ;;  %v2321_v1 = vmov 0.0   ;;  %v2322_v2 = vmov 0  }
  0x26   :  { %2061 = vmatprep.subr.bf16.mxu0 %v2319_v0  ;;  %1915 = vmatprep.mubr.msk.f32.mxu0 %vm2320_vm0, %v2321_v1  ;;  %v51_v3 = vld [vmem:[#allocation6] sm:$0xff]  ;;  %v52_v4 = vld [vmem:[#allocation6 + $0x8] sm:$0xff]  ;;  %v53_v5 = vld [vmem:[#allocation6 + $0x10] sm:$0xff]  ;;  %v2325_v30 = vmov 1   ;;  %vm210_vm1 = vcmask 261120   ;;  %v2326_v52 = vmov 2  }
  0x27   :  { %2169 = vset.pattern.permute.xlu0 %v2322_v2  ;;  %2067 = vmatprep.subr.bf16.mxu1 %v2319_v0  ;;  %v2411_v6 = vpack.c.bf16 %v52_v4, %v51_v3  ;;  %v54_v7 = vld [vmem:[#allocation6 + $0x18] sm:$0xff]  ;;  %s2338_s27 = smov 96   ;;  %vm1786_vm2 = vcmask 7168  }
  0x28   :  { %1926 = vmatprep.mubr.msk.f32.mxu1 %vm2320_vm0, %v2321_v1  ;;  %v2413_v8 = vld [vmem:[#allocation4] sm:$0xff]  ;;  %v2417_v9 = vpack.c.bf16 %v54_v7, %v53_v5  ;;  %2170 = vset.pattern.permute.xlu1 %v2325_v30 }
  0x29   :  { %61 = vperm.xlu0 %2169, %v2413_v8   ;;  %2063 = vmatpush3.bf16.msra.mxu0 %v2411_v6  ;;  %v2436_v11 = vld [vmem:[%s2717_s1] ss:$0 sm:$0xff]  ;;  %s2323_s1 = smov 64  }
  0x2a   :  { %2069 = vmatpush3.bf16.msra.mxu1 %v2411_v6  ;;  %2064 = vmatprep.subr.bf16.mxu0 %v2319_v0  ;;  %v2442_v13 = vld [vmem:[%s2719_s3] ss:$0 sm:$0xff]  ;;  %s2324_s3 = smov 32  }
  0x2b   :  { %2070 = vmatprep.subr.bf16.mxu1 %v2319_v0 }
  0x2d   :  { %2066 = vmatpush3.bf16.msra.mxu0 %v2417_v9  ;;  %2171 = vset.pattern.permute.xlu0 %v2326_v52 }
  0x2e   :  { %2072 = vmatpush3.bf16.msra.mxu1 %v2417_v9  ;;  %2073 = vmatprep.subr.bf16.mxu0 %v2319_v0 }
  0x2f   :  { %2079 = vmatprep.subr.bf16.mxu1 %v2319_v0 }
  0x30   :  { %1916 = vmatmul.mubr.f32.vlgmr.msra.gmra.mrb[0].mxu0 %v2321_v1 }
  0x31   :  { %2075 = vmatpush3.bf16.msra.mxu0 %v2411_v6  ;;  %1937 = vmatprep.mubr.msk.f32.mxu0 %vm2320_vm0, %v2321_v1 }
  0x32   :  { %2076 = vmatprep.subr.bf16.mxu0 %v2319_v0 }
  0x35   :  { %2078 = vmatpush3.bf16.msra.mxu0 %v2417_v9 }
  0x36   :  { %2085 = vmatprep.subr.bf16.mxu0 %v2319_v0 }
  0xa8   :  { %v62_v10 = vpop.permute.xlu0 %61 }
  0xa9   :  { %v70_v12 = vmul.f32 %v2436_v11, %v62_v10 }
  0xab   :  { %v77_v14 = vadd.f32 %v2442_v13, %v70_v12 }
 0x103   :  { %v280_v15 = vpop.f32.mrb[0].mxu0 }
 0x104   :  { %v284_v16 = vadd.f32 %v280_v15, %v77_v14  ;;  %v1917_v17 = vpop.f32.mrb[1].mxu0 }
 0x105   :  { %v2327_v17 = vmov 3  }
 0x106   :  { %v1796_v18 = vmul.f32 -1.442695, %v284_v16 }
 0x108   :  { %2183 = vpow2.f32 %v1796_v18 }
 0x112   :  { %v2184_v19 = vpop.eup %2183 }
 0x113   :  { %v288_v20 = vadd.f32 1.0, %v2184_v19 }
 0x115   :  { %2185 = vrcp.f32 %v288_v20 }
 0x11f   :  { %v2186_v21 = vpop.eup %2185 }
 0x120   :  { %v291_v22 = vmul.f32 2.0, %v2186_v21  ;;  %v293_v26 = vmul.f32 0.0, %v2186_v21 }
 0x122   :  { %v1797_v23 = vadd.f32 -1.0, %v291_v22 }
 0x124   :  { %295 = vrot.lane.b32.xlu0 %v1797_v23, %s2323_s1 }
 0x196   :  { %v296_v24 = vpop.permute.xlu0 %295 }
 0x197   :  { %v298_v25 = vmul.f32 %v2186_v21, %v296_v24 }
 0x199   :  { %300 = vrot.lane.b32.xlu1 %v298_v25, %s2324_s3 }
 0x20b   :  { %v301_v27 = vpop.permute.xlu1 %300 }
 0x20c   :  { %v303_v28 = vadd.f32 %v301_v27, %v293_v26 }
 0x20e   :  { %2187 = vtanh.f32 %v303_v28 }
 0x218   :  { %v2188_v29 = vpop.eup %2187 }
 0x219   :  { %306 = vrot.lane.b32.xlu1 %v2188_v29, %s2323_s1 }
 0x21d   :  { %82 = vperm.xlu1 %2170, %v2413_v8  }
 0x28b   :  { %v307_v31 = vpop.permute.xlu1 %306 }
 0x28c   :  { %v2449_v32 = vmul.f32 %v2186_v21, %v307_v31 }
 0x28e   :  { %322 = vrot.lane.b32.xlu0 %v2449_v32, %s2324_s3 }
 0x29c   :  { %v83_v34 = vpop.permute.xlu1 %82 }
 0x29d   :  { %v85_v35 = vmul.f32 %v2436_v11, %v83_v34 }
 0x29f   :  { %v86_v36 = vadd.f32 %v2442_v13, %v85_v35 }
 0x300   :  { %v323_v33 = vpop.permute.xlu0 %322 }
 0x301   :  { %1927 = vmatmul.mubr.msk.f32.vlgmr.msra.gmra.mrb[0].mxu1 %vm210_vm1, %v323_v33 }
 0x302   :  { %2081 = vmatpush3.bf16.msra.mxu1 %v2411_v6  ;;  %1948 = vmatprep.mubr.msk.f32.mxu1 %vm2320_vm0, %v2321_v1 }
 0x303   :  { %2082 = vmatprep.subr.bf16.mxu1 %v2319_v0 }
 0x306   :  { %2084 = vmatpush3.bf16.msra.mxu1 %v2417_v9 }
 0x307   :  { %2091 = vmatprep.subr.bf16.mxu1 %v2319_v0 }
 0x3d4   :  { %v392_v37 = vpop.f32.mrb[0].mxu1 }
 0x3d5   :  { %v396_v38 = vadd.f32 %v392_v37, %v86_v36  ;;  %v1928_v39 = vpop.f32.mrb[1].mxu1 }
 0x3d7   :  { %v1799_v40 = vmul.f32 -1.442695, %v396_v38 }
 0x3d9   :  { %2189 = vpow2.f32 %v1799_v40  ;;  %v2328_v40 = vmov 4  }
 0x3e3   :  { %v2190_v41 = vpop.eup %2189 }
 0x3e4   :  { %v400_v42 = vadd.f32 1.0, %v2190_v41 }
 0x3e6   :  { %2191 = vrcp.f32 %v400_v42 }
 0x3f0   :  { %v2192_v43 = vpop.eup %2191 }
 0x3f1   :  { %v403_v44 = vmul.f32 2.0, %v2192_v43  ;;  %v405_v48 = vmul.f32 %v2192_v43, %v303_v28 }
 0x3f3   :  { %v1800_v45 = vadd.f32 -1.0, %v403_v44 }
 0x3f5   :  { %407 = vrot.lane.b32.xlu0 %v1800_v45, %s2323_s1 }
 0x467   :  { %v408_v46 = vpop.permute.xlu0 %407 }
 0x468   :  { %v410_v47 = vmul.f32 %v2192_v43, %v408_v46 }
 0x46a   :  { %412 = vrot.lane.b32.xlu1 %v410_v47, %s2324_s3 }
 0x4dc   :  { %v413_v49 = vpop.permute.xlu1 %412 }
 0x4dd   :  { %v415_v50 = vadd.f32 %v413_v49, %v405_v48 }
 0x4df   :  { %2193 = vtanh.f32 %v415_v50 }
 0x4e9   :  { %v2194_v51 = vpop.eup %2193 }
 0x4ea   :  { %418 = vrot.lane.b32.xlu0 %v2194_v51, %s2323_s1 }
 0x4ee   :  { %92 = vperm.xlu0 %2171, %v2413_v8  }
 0x4f2   :  { %2172 = vset.pattern.permute.xlu0 %v2327_v17 }
 0x55c   :  { %v419_v53 = vpop.permute.xlu0 %418 }
 0x55d   :  { %v2466_v54 = vmul.f32 %v2192_v43, %v419_v53 }
 0x55f   :  { %434 = vrot.lane.b32.xlu1 %v2466_v54, %s2324_s3 }
 0x56d   :  { %v93_v56 = vpop.permute.xlu0 %92 }
 0x56e   :  { %v95_v57 = vmul.f32 %v2436_v11, %v93_v56 }
 0x570   :  { %v96_v58 = vadd.f32 %v2442_v13, %v95_v57 }
 0x5d1   :  { %v435_v55 = vpop.permute.xlu1 %434 }
 0x5d2   :  { %1938 = vmatmul.mubr.msk.f32.vlgmr.msra.gmra.mrb[2].mxu0 %vm210_vm1, %v435_v55 }
 0x5d3   :  { %2087 = vmatpush3.bf16.msra.mxu0 %v2411_v6  ;;  %1959 = vmatprep.mubr.msk.f32.mxu0 %vm2320_vm0, %v2321_v1 }
 0x5d4   :  { %2088 = vmatprep.subr.bf16.mxu0 %v2319_v0 }
 0x5d7   :  { %2090 = vmatpush3.bf16.msra.mxu0 %v2417_v9 }
 0x5d8   :  { %2097 = vmatprep.subr.bf16.mxu0 %v2319_v0 }
 0x6a5   :  { %v504_v59 = vpop.f32.mrb[2].mxu0 }
 0x6a6   :  { %v508_v60 = vadd.f32 %v504_v59, %v96_v58  ;;  %v1939_v61 = vpop.f32.mrb[3].mxu0 }
 0x6a8   :  { %v1802_v62 = vmul.f32 -1.442695, %v508_v60 }
 0x6aa   :  { %2195 = vpow2.f32 %v1802_v62 }
 0x6b4   :  { %v2196_v63 = vpop.eup %2195 }
 0x6b5   :  { %v512_v2 = vadd.f32 1.0, %v2196_v63  ;;  %v2329_v63 = vmov 5  }
 0x6b7   :  { %2197 = vrcp.f32 %v512_v2 }
 0x6c1   :  { %v2198_v3 = vpop.eup %2197 }
 0x6c2   :  { %v515_v4 = vmul.f32 2.0, %v2198_v3  ;;  %v517_v12 = vmul.f32 %v2198_v3, %v415_v50 }
 0x6c4   :  { %v1803_v5 = vadd.f32 -1.0, %v515_v4 }
 0x6c6   :  { %519 = vrot.lane.b32.xlu1 %v1803_v5, %s2323_s1 }
 0x738   :  { %v520_v7 = vpop.permute.xlu1 %519 }
 0x739   :  { %v522_v10 = vmul.f32 %v2198_v3, %v520_v7 }
 0x73b   :  { %524 = vrot.lane.b32.xlu1 %v522_v10, %s2324_s3 }
 0x7ad   :  { %v525_v14 = vpop.permute.xlu1 %524 }
 0x7ae   :  { %v527_v15 = vadd.f32 %v525_v14, %v517_v12 }
 0x7b0   :  { %2199 = vtanh.f32 %v527_v15 }
 0x7ba   :  { %v2200_v16 = vpop.eup %2199 }
 0x7bb   :  { %530 = vrot.lane.b32.xlu0 %v2200_v16, %s2323_s1 }
 0x7bf   :  { %102 = vperm.xlu0 %2172, %v2413_v8  }
 0x7c3   :  { %2173 = vset.pattern.permute.xlu0 %v2328_v40 }
 0x82d   :  { %v531_v18 = vpop.permute.xlu0 %530 }
 0x82e   :  { %v2483_v19 = vmul.f32 %v2198_v3, %v531_v18 }
 0x830   :  { %546 = vrot.lane.b32.xlu1 %v2483_v19, %s2324_s3 }
 0x83e   :  { %v103_v21 = vpop.permute.xlu0 %102 }
 0x83f   :  { %v105_v22 = vmul.f32 %v2436_v11, %v103_v21 }
 0x841   :  { %v106_v23 = vadd.f32 %v2442_v13, %v105_v22 }
 0x8a2   :  { %v547_v20 = vpop.permute.xlu1 %546 }
 0x8a3   :  { %1949 = vmatmul.mubr.msk.f32.vlgmr.msra.gmra.mrb[2].mxu1 %vm210_vm1, %v547_v20 }
 0x8a4   :  { %2093 = vmatpush3.bf16.msra.mxu1 %v2411_v6  ;;  %1970 = vmatprep.mubr.msk.f32.mxu1 %vm2320_vm0, %v2321_v1 }
 0x8a5   :  { %2094 = vmatprep.subr.bf16.mxu1 %v2319_v0 }
 0x8a8   :  { %2096 = vmatpush3.bf16.msra.mxu1 %v2417_v9 }
 0x8a9   :  { %2103 = vmatprep.subr.bf16.mxu1 %v2319_v0 }
 0x976   :  { %v616_v24 = vpop.f32.mrb[2].mxu1 }
 0x977   :  { %v620_v25 = vadd.f32 %v616_v24, %v106_v23  ;;  %v1950_v26 = vpop.f32.mrb[3].mxu1 }
 0x979   :  { %v1805_v27 = vmul.f32 -1.442695, %v620_v25 }
 0x97b   :  { %2201 = vpow2.f32 %v1805_v27 }
 0x985   :  { %v2202_v28 = vpop.eup %2201 }
 0x986   :  { %v624_v29 = vadd.f32 1.0, %v2202_v28 }
 0x988   :  { %2203 = vrcp.f32 %v624_v29  ;;  %v2330_v29 = vmov 6  }
 0x992   :  { %v2204_v30 = vpop.eup %2203 }
 0x993   :  { %v627_v31 = vmul.f32 2.0, %v2204_v30  ;;  %v629_v36 = vmul.f32 %v2204_v30, %v527_v15 }
 0x995   :  { %v1806_v33 = vadd.f32 -1.0, %v627_v31 }
 0x997   :  { %631 = vrot.lane.b32.xlu1 %v1806_v33, %s2323_s1 }
 0xa09   :  { %v632_v34 = vpop.permute.xlu1 %631 }
 0xa0a   :  { %v634_v35 = vmul.f32 %v2204_v30, %v632_v34 }
 0xa0c   :  { %636 = vrot.lane.b32.xlu1 %v634_v35, %s2324_s3 }
 0xa7e   :  { %v637_v37 = vpop.permute.xlu1 %636 }
 0xa7f   :  { %v639_v38 = vadd.f32 %v637_v37, %v629_v36 }
 0xa81   :  { %2205 = vtanh.f32 %v639_v38 }
 0xa8b   :  { %v2206_v39 = vpop.eup %2205 }
 0xa8c   :  { %642 = vrot.lane.b32.xlu0 %v2206_v39, %s2323_s1 }
 0xa90   :  { %112 = vperm.xlu0 %2173, %v2413_v8  }
 0xa94   :  { %2174 = vset.pattern.permute.xlu0 %v2329_v63 }
 0xafe   :  { %v643_v41 = vpop.permute.xlu0 %642 }
 0xaff   :  { %v2500_v42 = vmul.f32 %v2204_v30, %v643_v41 }
 0xb01   :  { %658 = vrot.lane.b32.xlu1 %v2500_v42, %s2324_s3 }
 0xb0f   :  { %v113_v44 = vpop.permute.xlu0 %112 }
 0xb10   :  { %v115_v45 = vmul.f32 %v2436_v11, %v113_v44 }
 0xb12   :  { %v116_v46 = vadd.f32 %v2442_v13, %v115_v45 }
 0xb73   :  { %v659_v43 = vpop.permute.xlu1 %658 }
 0xb74   :  { %1960 = vmatmul.mubr.msk.f32.vlgmr.msra.gmra.mrb[4].mxu0 %vm210_vm1, %v659_v43 }
 0xb75   :  { %2099 = vmatpush3.bf16.msra.mxu0 %v2411_v6  ;;  %1981 = vmatprep.mubr.msk.f32.mxu0 %vm2320_vm0, %v2321_v1 }
 0xb76   :  { %2100 = vmatprep.subr.bf16.mxu0 %v2319_v0 }
 0xb79   :  { %2102 = vmatpush3.bf16.msra.mxu0 %v2417_v9 }
 0xb7a   :  { %2109 = vmatprep.subr.bf16.mxu0 %v2319_v0 }
 0xc47   :  { %v728_v47 = vpop.f32.mrb[4].mxu0 }
 0xc48   :  { %v732_v48 = vadd.f32 %v728_v47, %v116_v46  ;;  %v1961_v49 = vpop.f32.mrb[5].mxu0 }
 0xc4a   :  { %v1808_v50 = vmul.f32 -1.442695, %v732_v48 }
 0xc4c   :  { %2207 = vpow2.f32 %v1808_v50 }
 0xc56   :  { %v2208_v51 = vpop.eup %2207 }
 0xc57   :  { %v736_v52 = vadd.f32 1.0, %v2208_v51 }
 0xc59   :  { %2209 = vrcp.f32 %v736_v52 }
 0xc63   :  { %v2210_v53 = vpop.eup %2209 }
 0xc64   :  { %v739_v55 = vmul.f32 2.0, %v2210_v53  ;;  %v741_v59 = vmul.f32 %v2210_v53, %v639_v38 }
 0xc66   :  { %v1809_v56 = vadd.f32 -1.0, %v739_v55 }
 0xc68   :  { %743 = vrot.lane.b32.xlu1 %v1809_v56, %s2323_s1 }
 0xcda   :  { %v744_v57 = vpop.permute.xlu1 %743 }
 0xcdb   :  { %v746_v58 = vmul.f32 %v2210_v53, %v744_v57 }
 0xcdd   :  { %748 = vrot.lane.b32.xlu1 %v746_v58, %s2324_s3 }
 0xd4f   :  { %v749_v60 = vpop.permute.xlu1 %748 }
 0xd50   :  { %v751_v61 = vadd.f32 %v749_v60, %v741_v59 }
 0xd52   :  { %2211 = vtanh.f32 %v751_v61 }
 0xd5c   :  { %v2212_v62 = vpop.eup %2211 }
 0xd5d   :  { %754 = vrot.lane.b32.xlu0 %v2212_v62, %s2323_s1 }
 0xd61   :  { %122 = vperm.xlu0 %2174, %v2413_v8  }
 0xd65   :  { %2175 = vset.pattern.permute.xlu0 %v2330_v29 }
 0xdcf   :  { %v755_v2 = vpop.permute.xlu0 %754 }
 0xdd0   :  { %v2517_v3 = vmul.f32 %v2210_v53, %v755_v2  ;;  %v2331_v53 = vmov 7  }
 0xdd2   :  { %770 = vrot.lane.b32.xlu1 %v2517_v3, %s2324_s3 }
 0xde0   :  { %v123_v5 = vpop.permute.xlu0 %122 }
 0xde1   :  { %v125_v7 = vmul.f32 %v2436_v11, %v123_v5 }
 0xde3   :  { %v126_v10 = vadd.f32 %v2442_v13, %v125_v7 }
 0xe44   :  { %v771_v4 = vpop.permute.xlu1 %770 }
 0xe45   :  { %1971 = vmatmul.mubr.msk.f32.vlgmr.msra.gmra.mrb[4].mxu1 %vm210_vm1, %v771_v4 }
 0xe46   :  { %2105 = vmatpush3.bf16.msra.mxu1 %v2411_v6  ;;  %1992 = vmatprep.mubr.msk.f32.mxu1 %vm2320_vm0, %v2321_v1 }
 0xe47   :  { %2106 = vmatprep.subr.bf16.mxu1 %v2319_v0 }
 0xe4a   :  { %2108 = vmatpush3.bf16.msra.mxu1 %v2417_v9 }
 0xe4b   :  { %2115 = vmatprep.subr.bf16.mxu1 %v2319_v0 }
 0xf18   :  { %v840_v12 = vpop.f32.mrb[4].mxu1 }
 0xf19   :  { %v844_v14 = vadd.f32 %v840_v12, %v126_v10  ;;  %v1972_v15 = vpop.f32.mrb[5].mxu1 }
 0xf1b   :  { %v1811_v16 = vmul.f32 -1.442695, %v844_v14 }
 0xf1d   :  { %2213 = vpow2.f32 %v1811_v16 }
 0xf27   :  { %v2214_v17 = vpop.eup %2213 }
 0xf28   :  { %v848_v18 = vadd.f32 1.0, %v2214_v17 }
 0xf2a   :  { %2215 = vrcp.f32 %v848_v18 }
 0xf34   :  { %v2216_v20 = vpop.eup %2215 }
 0xf35   :  { %v851_v21 = vmul.f32 2.0, %v2216_v20  ;;  %v853_v25 = vmul.f32 %v2216_v20, %v751_v61 }
 0xf37   :  { %v1812_v22 = vadd.f32 -1.0, %v851_v21  ;;  %v2332_v21 = vmov 8  }
 0xf39   :  { %855 = vrot.lane.b32.xlu1 %v1812_v22, %s2323_s1 }
 0xfab   :  { %v856_v23 = vpop.permute.xlu1 %855 }
 0xfac   :  { %v858_v24 = vmul.f32 %v2216_v20, %v856_v23 }
 0xfae   :  { %860 = vrot.lane.b32.xlu1 %v858_v24, %s2324_s3 }
0x1020   :  { %v861_v26 = vpop.permute.xlu1 %860 }
0x1021   :  { %v863_v27 = vadd.f32 %v861_v26, %v853_v25 }
0x1023   :  { %2217 = vtanh.f32 %v863_v27 }
0x102d   :  { %v2218_v28 = vpop.eup %2217 }
0x102e   :  { %866 = vrot.lane.b32.xlu0 %v2218_v28, %s2323_s1 }
0x1032   :  { %132 = vperm.xlu0 %2175, %v2413_v8  }
0x1036   :  { %2176 = vset.pattern.permute.xlu0 %v2331_v53 }
0x10a0   :  { %v867_v30 = vpop.permute.xlu0 %866 }
0x10a1   :  { %v2534_v31 = vmul.f32 %v2216_v20, %v867_v30 }
0x10a3   :  { %882 = vrot.lane.b32.xlu1 %v2534_v31, %s2324_s3 }
0x10b1   :  { %v133_v34 = vpop.permute.xlu0 %132 }
0x10b2   :  { %v135_v35 = vmul.f32 %v2436_v11, %v133_v34 }
0x10b4   :  { %v136_v36 = vadd.f32 %v2442_v13, %v135_v35 }
0x1115   :  { %v883_v33 = vpop.permute.xlu1 %882 }
0x1116   :  { %1982 = vmatmul.mubr.msk.f32.vlgmr.msra.gmra.mrb[6].mxu0 %vm210_vm1, %v883_v33 }
0x1117   :  { %2111 = vmatpush3.bf16.msra.mxu0 %v2411_v6  ;;  %2003 = vmatprep.mubr.msk.f32.mxu0 %vm2320_vm0, %v2321_v1 }
0x1118   :  { %2112 = vmatprep.subr.bf16.mxu0 %v2319_v0 }
0x111b   :  { %2114 = vmatpush3.bf16.msra.mxu0 %v2417_v9 }
0x111c   :  { %2121 = vmatprep.subr.bf16.mxu0 %v2319_v0 }
0x11e9   :  { %v952_v37 = vpop.f32.mrb[6].mxu0 }
0x11ea   :  { %v956_v38 = vadd.f32 %v952_v37, %v136_v36  ;;  %v1983_v39 = vpop.f32.mrb[7].mxu0 }
0x11ec   :  { %v1814_v40 = vmul.f32 -1.442695, %v956_v38 }
0x11ee   :  { %2219 = vpow2.f32 %v1814_v40 }
0x11f8   :  { %v2220_v41 = vpop.eup %2219 }
0x11f9   :  { %v960_v43 = vadd.f32 1.0, %v2220_v41 }
0x11fb   :  { %2221 = vrcp.f32 %v960_v43 }
0x1205   :  { %v2222_v44 = vpop.eup %2221 }
0x1206   :  { %v963_v45 = vmul.f32 2.0, %v2222_v44  ;;  %v965_v49 = vmul.f32 %v2222_v44, %v863_v27 }
0x1208   :  { %v1815_v46 = vadd.f32 -1.0, %v963_v45 }
0x120a   :  { %967 = vrot.lane.b32.xlu1 %v1815_v46, %s2323_s1  ;;  %v2333_v46 = vmov 9  }
0x127c   :  { %v968_v47 = vpop.permute.xlu1 %967 }
0x127d   :  { %v970_v48 = vmul.f32 %v2222_v44, %v968_v47 }
0x127f   :  { %972 = vrot.lane.b32.xlu1 %v970_v48, %s2324_s3 }
0x12f1   :  { %v973_v50 = vpop.permute.xlu1 %972 }
0x12f2   :  { %v975_v51 = vadd.f32 %v973_v50, %v965_v49 }
0x12f4   :  { %2223 = vtanh.f32 %v975_v51 }
0x12fe   :  { %v2224_v52 = vpop.eup %2223 }
0x12ff   :  { %978 = vrot.lane.b32.xlu0 %v2224_v52, %s2323_s1 }
0x1303   :  { %142 = vperm.xlu0 %2176, %v2413_v8  }
0x1307   :  { %2177 = vset.pattern.permute.xlu0 %v2332_v21 }
0x1371   :  { %v979_v55 = vpop.permute.xlu0 %978 }
0x1372   :  { %v2551_v56 = vmul.f32 %v2222_v44, %v979_v55 }
0x1374   :  { %994 = vrot.lane.b32.xlu1 %v2551_v56, %s2324_s3 }
0x1382   :  { %v143_v58 = vpop.permute.xlu0 %142 }
0x1383   :  { %v145_v59 = vmul.f32 %v2436_v11, %v143_v58 }
0x1385   :  { %v146_v60 = vadd.f32 %v2442_v13, %v145_v59 }
0x13e6   :  { %v995_v57 = vpop.permute.xlu1 %994 }
0x13e7   :  { %1993 = vmatmul.mubr.msk.f32.vlgmr.msra.gmra.mrb[6].mxu1 %vm210_vm1, %v995_v57 }
0x13e8   :  { %2117 = vmatpush3.bf16.msra.mxu1 %v2411_v6  ;;  %2014 = vmatprep.mubr.msk.f32.mxu1 %vm2320_vm0, %v2321_v1 }
0x13e9   :  { %2118 = vmatprep.subr.bf16.mxu1 %v2319_v0 }
0x13ec   :  { %2120 = vmatpush3.bf16.msra.mxu1 %v2417_v9 }
0x13ed   :  { %2127 = vmatprep.subr.bf16.mxu1 %v2319_v0 }
0x14ba   :  { %v1064_v61 = vpop.f32.mrb[6].mxu1 }
0x14bb   :  { %v1068_v62 = vadd.f32 %v1064_v61, %v146_v60  ;;  %v1994_v63 = vpop.f32.mrb[7].mxu1 }
0x14bd   :  { %v1817_v2 = vmul.f32 -1.442695, %v1068_v62 }
0x14bf   :  { %2225 = vpow2.f32 %v1817_v2 }
0x14c9   :  { %v2226_v4 = vpop.eup %2225 }
0x14ca   :  { %v1072_v5 = vadd.f32 1.0, %v2226_v4 }
0x14cc   :  { %2227 = vrcp.f32 %v1072_v5 }
0x14d6   :  { %v2228_v7 = vpop.eup %2227 }
0x14d7   :  { %v1075_v10 = vmul.f32 2.0, %v2228_v7  ;;  %v1077_v16 = vmul.f32 %v2228_v7, %v975_v51 }
0x14d9   :  { %v1818_v12 = vadd.f32 -1.0, %v1075_v10 }
0x14db   :  { %1079 = vrot.lane.b32.xlu1 %v1818_v12, %s2323_s1 }
0x154d   :  { %v1080_v14 = vpop.permute.xlu1 %1079 }
0x154e   :  { %v1082_v15 = vmul.f32 %v2228_v7, %v1080_v14  ;;  %v2334_v14 = vmov 10  }
0x1550   :  { %1084 = vrot.lane.b32.xlu1 %v1082_v15, %s2324_s3 }
0x15c2   :  { %v1085_v17 = vpop.permute.xlu1 %1084 }
0x15c3   :  { %v1087_v18 = vadd.f32 %v1085_v17, %v1077_v16 }
0x15c5   :  { %2229 = vtanh.f32 %v1087_v18 }
0x15cf   :  { %v2230_v20 = vpop.eup %2229 }
0x15d0   :  { %1090 = vrot.lane.b32.xlu0 %v2230_v20, %s2323_s1 }
0x15d4   :  { %152 = vperm.xlu0 %2177, %v2413_v8  }
0x15d8   :  { %2178 = vset.pattern.permute.xlu0 %v2333_v46 }
0x1642   :  { %v1091_v22 = vpop.permute.xlu0 %1090 }
0x1643   :  { %v2568_v23 = vmul.f32 %v2228_v7, %v1091_v22 }
0x1645   :  { %1106 = vrot.lane.b32.xlu1 %v2568_v23, %s2324_s3 }
0x1653   :  { %v153_v25 = vpop.permute.xlu0 %152 }
0x1654   :  { %v155_v26 = vmul.f32 %v2436_v11, %v153_v25 }
0x1656   :  { %v156_v27 = vadd.f32 %v2442_v13, %v155_v26 }
0x16b7   :  { %v1107_v24 = vpop.permute.xlu1 %1106 }
0x16b8   :  { %2004 = vmatmul.mubr.msk.f32.vlgmr.msra.gmra.mrb[8].mxu0 %vm210_vm1, %v1107_v24 }
0x16b9   :  { %2123 = vmatpush3.bf16.msra.mxu0 %v2411_v6  ;;  %2025 = vmatprep.mubr.msk.f32.mxu0 %vm2320_vm0, %v2321_v1 }
0x16ba   :  { %2124 = vmatprep.subr.bf16.mxu0 %v2319_v0 }
0x16bd   :  { %2126 = vmatpush3.bf16.msra.mxu0 %v2417_v9 }
0x16be   :  { %2133 = vmatprep.subr.bf16.mxu0 %v2319_v0 }
0x178b   :  { %v1176_v28 = vpop.f32.mrb[8].mxu0 }
0x178c   :  { %v1180_v29 = vadd.f32 %v1176_v28, %v156_v27  ;;  %v2005_v30 = vpop.f32.mrb[9].mxu0 }
0x178e   :  { %v1820_v33 = vmul.f32 -1.442695, %v1180_v29 }
0x1790   :  { %2231 = vpow2.f32 %v1820_v33 }
0x179a   :  { %v2232_v34 = vpop.eup %2231 }
0x179b   :  { %v1184_v35 = vadd.f32 1.0, %v2232_v34 }
0x179d   :  { %2233 = vrcp.f32 %v1184_v35 }
0x17a7   :  { %v2234_v36 = vpop.eup %2233 }
0x17a8   :  { %v1187_v37 = vmul.f32 2.0, %v2234_v36  ;;  %v1189_v41 = vmul.f32 %v2234_v36, %v1087_v18 }
0x17aa   :  { %v1821_v38 = vadd.f32 -1.0, %v1187_v37 }
0x17ac   :  { %1191 = vrot.lane.b32.xlu1 %v1821_v38, %s2323_s1 }
0x181e   :  { %v1192_v39 = vpop.permute.xlu1 %1191 }
0x181f   :  { %v1194_v40 = vmul.f32 %v2234_v36, %v1192_v39 }
0x1821   :  { %1196 = vrot.lane.b32.xlu1 %v1194_v40, %s2324_s3  ;;  %v2335_v40 = vmov 11  }
0x1893   :  { %v1197_v43 = vpop.permute.xlu1 %1196 }
0x1894   :  { %v1199_v44 = vadd.f32 %v1197_v43, %v1189_v41 }
0x1896   :  { %2235 = vtanh.f32 %v1199_v44 }
0x18a0   :  { %v2236_v45 = vpop.eup %2235 }
0x18a1   :  { %1202 = vrot.lane.b32.xlu0 %v2236_v45, %s2323_s1 }
0x18a5   :  { %162 = vperm.xlu0 %2178, %v2413_v8  }
0x18a9   :  { %2179 = vset.pattern.permute.xlu0 %v2334_v14 }
0x1913   :  { %v1203_v47 = vpop.permute.xlu0 %1202 }
0x1914   :  { %v2585_v48 = vmul.f32 %v2234_v36, %v1203_v47 }
0x1916   :  { %1218 = vrot.lane.b32.xlu1 %v2585_v48, %s2324_s3 }
0x1924   :  { %v163_v50 = vpop.permute.xlu0 %162 }
0x1925   :  { %v165_v51 = vmul.f32 %v2436_v11, %v163_v50 }
0x1927   :  { %v166_v52 = vadd.f32 %v2442_v13, %v165_v51 }
0x1988   :  { %v1219_v49 = vpop.permute.xlu1 %1218 }
0x1989   :  { %2015 = vmatmul.mubr.msk.f32.vlgmr.msra.gmra.mrb[8].mxu1 %vm210_vm1, %v1219_v49 }
0x198a   :  { %2129 = vmatpush3.bf16.msra.mxu1 %v2411_v6  ;;  %2036 = vmatprep.mubr.msk.f32.mxu1 %vm2320_vm0, %v2321_v1 }
0x198b   :  { %2130 = vmatprep.subr.bf16.mxu1 %v2319_v0 }
0x198e   :  { %2132 = vmatpush3.bf16.msra.mxu1 %v2417_v9 }
0x198f   :  { %2139 = vmatprep.subr.bf16.mxu1 %v2319_v0 }
0x1a5c   :  { %v1288_v53 = vpop.f32.mrb[8].mxu1 }
0x1a5d   :  { %v1292_v55 = vadd.f32 %v1288_v53, %v166_v52  ;;  %v2016_v57 = vpop.f32.mrb[9].mxu1 }
0x1a5f   :  { %v1823_v58 = vmul.f32 -1.442695, %v1292_v55 }
0x1a61   :  { %2237 = vpow2.f32 %v1823_v58 }
0x1a6b   :  { %v2238_v59 = vpop.eup %2237 }
0x1a6c   :  { %v1296_v60 = vadd.f32 1.0, %v2238_v59 }
0x1a6e   :  { %2239 = vrcp.f32 %v1296_v60 }
0x1a78   :  { %v2240_v61 = vpop.eup %2239 }
0x1a79   :  { %v1299_v62 = vmul.f32 2.0, %v2240_v61  ;;  %v1301_v5 = vmul.f32 %v2240_v61, %v1199_v44 }
0x1a7b   :  { %v1824_v63 = vadd.f32 -1.0, %v1299_v62  ;;  %v2336_v62 = vmov 12  }
0x1a7d   :  { %1303 = vrot.lane.b32.xlu1 %v1824_v63, %s2323_s1 }
0x1aef   :  { %v1304_v2 = vpop.permute.xlu1 %1303 }
0x1af0   :  { %v1306_v4 = vmul.f32 %v2240_v61, %v1304_v2 }
0x1af2   :  { %1308 = vrot.lane.b32.xlu1 %v1306_v4, %s2324_s3 }
0x1b64   :  { %v1309_v7 = vpop.permute.xlu1 %1308 }
0x1b65   :  { %v1311_v10 = vadd.f32 %v1309_v7, %v1301_v5 }
0x1b67   :  { %2241 = vtanh.f32 %v1311_v10 }
0x1b71   :  { %v2242_v12 = vpop.eup %2241 }
0x1b72   :  { %1314 = vrot.lane.b32.xlu0 %v2242_v12, %s2323_s1 }
0x1b76   :  { %172 = vperm.xlu0 %2179, %v2413_v8  }
0x1b7a   :  { %2180 = vset.pattern.permute.xlu0 %v2335_v40 }
0x1be4   :  { %v1315_v15 = vpop.permute.xlu0 %1314 }
0x1be5   :  { %v2602_v16 = vmul.f32 %v2240_v61, %v1315_v15 }
0x1be7   :  { %1330 = vrot.lane.b32.xlu1 %v2602_v16, %s2324_s3 }
0x1bf5   :  { %v173_v18 = vpop.permute.xlu0 %172 }
0x1bf6   :  { %v175_v20 = vmul.f32 %v2436_v11, %v173_v18 }
0x1bf8   :  { %v176_v21 = vadd.f32 %v2442_v13, %v175_v20 }
0x1c59   :  { %v1331_v17 = vpop.permute.xlu1 %1330 }
0x1c5a   :  { %2026 = vmatmul.mubr.msk.f32.vlgmr.msra.gmra.mrb[10].mxu0 %vm210_vm1, %v1331_v17 }
0x1c5b   :  { %2135 = vmatpush3.bf16.msra.mxu0 %v2411_v6  ;;  %2047 = vmatprep.mubr.msk.f32.mxu0 %vm2320_vm0, %v2321_v1 }
0x1c5c   :  { %2136 = vmatprep.subr.bf16.mxu0 %v2319_v0 }
0x1c5f   :  { %2138 = vmatpush3.bf16.msra.mxu0 %v2417_v9 }
0x1d2d   :  { %v1400_v22 = vpop.f32.mrb[10].mxu0 }
0x1d2e   :  { %v1404_v24 = vadd.f32 %v1400_v22, %v176_v21  ;;  %v2027_v25 = vpop.f32.mrb[11].mxu0 }
0x1d30   :  { %v1826_v26 = vmul.f32 -1.442695, %v1404_v24 }
0x1d32   :  { %2243 = vpow2.f32 %v1826_v26 }
0x1d3c   :  { %v2244_v27 = vpop.eup %2243 }
0x1d3d   :  { %v1408_v28 = vadd.f32 1.0, %v2244_v27  ;;  %v2337_v27 = vmov 13  }
0x1d3f   :  { %2245 = vrcp.f32 %v1408_v28 }
0x1d49   :  { %v2246_v29 = vpop.eup %2245 }
0x1d4a   :  { %v1411_v30 = vmul.f32 2.0, %v2246_v29  ;;  %v1413_v36 = vmul.f32 %v2246_v29, %v1311_v10 }
0x1d4c   :  { %v1827_v33 = vadd.f32 -1.0, %v1411_v30 }
0x1d4e   :  { %1415 = vrot.lane.b32.xlu1 %v1827_v33, %s2323_s1  ;;  %v310_v33 = vlaneseq }
0x1dc0   :  { %v1416_v34 = vpop.permute.xlu1 %1415 }
0x1dc1   :  { %v1418_v35 = vmul.f32 %v2246_v29, %v1416_v34  ;;  %v2646_v34 = vshrl.u32 %v310_v33, 7 }
0x1dc3   :  { %1420 = vrot.lane.b32.xlu1 %v1418_v35, %s2324_s3 }
0x1e35   :  { %v1421_v37 = vpop.permute.xlu1 %1420 }
0x1e36   :  { %v1423_v38 = vadd.f32 %v1421_v37, %v1413_v36  ;;  %v312_v36 = vsub.s32 0, %v2646_v34  ;;  %v56_v37 = vld [vmem:[%s2720_s4] sm:$0xff] }
0x1e38   :  { %2247 = vtanh.f32 %v1423_v38 }
0x1e42   :  { %v2248_v39 = vpop.eup %2247 }
0x1e43   :  { %1426 = vrot.lane.b32.xlu0 %v2248_v39, %s2323_s1  ;;  %v536_v39 = vsub.s32 2, %v2646_v34 }
0x1e45   :  { %v537_v40 = vrot.slane %v56_v37, %v536_v39 }
0x1e47   :  { %182 = vperm.xlu0 %2180, %v2413_v8  }
0x1e4b   :  { %2181 = vset.pattern.permute.xlu0 %v2336_v62 }
0x1eb5   :  { %v1427_v41 = vpop.permute.xlu0 %1426 }
0x1eb6   :  { %v2618_v43 = vmul.f32 %v2246_v29, %v1427_v41  ;;  %v760_v41 = vsub.s32 4, %v2646_v34 }
0x1eb8   :  { %1442 = vrot.lane.b32.xlu1 %v2618_v43, %s2324_s3 }
0x1ec6   :  { %v183_v45 = vpop.permute.xlu0 %182 }
0x1ec7   :  { %v185_v46 = vmul.f32 %v2436_v11, %v183_v45  ;;  %v984_v45 = vsub.s32 6, %v2646_v34 }
0x1ec9   :  { %v186_v47 = vadd.f32 %v2442_v13, %v185_v46  ;;  %v985_v46 = vrot.slane %v56_v37, %v984_v45 }
0x1f2a   :  { %v1443_v44 = vpop.permute.xlu1 %1442 }
0x1f2b   :  { %2037 = vmatmul.mubr.msk.f32.vlgmr.msra.gmra.mrb[10].mxu1 %vm210_vm1, %v1443_v44  ;;  %v761_v44 = vrot.slane %v56_v37, %v760_v41 }
0x1f2c   :  { %2141 = vmatpush3.bf16.msra.mxu1 %v2411_v6  ;;  %2058 = vmatprep.mubr.msk.f32.mxu1 %vm2320_vm0, %v2321_v1 }
0x1f2d   :  { %2142 = vmatprep.subr.bf16.mxu1 %v2319_v0 }
0x1f30   :  { %2144 = vmatpush3.bf16.msra.mxu1 %v2417_v9 }
0x1ffe   :  { %v1512_v49 = vpop.f32.mrb[10].mxu1 }
0x1fff   :  { %v1516_v50 = vadd.f32 %v1512_v49, %v186_v47  ;;  %v2038_v51 = vpop.f32.mrb[11].mxu1 }
0x2001   :  { %v1829_v52 = vmul.f32 -1.442695, %v1516_v50 }
0x2003   :  { %2249 = vpow2.f32 %v1829_v52 }
0x200d   :  { %v2250_v53 = vpop.eup %2249 }
0x200e   :  { %v1520_v55 = vadd.f32 1.0, %v2250_v53 }
0x2010   :  { %2251 = vrcp.f32 %v1520_v55 }
0x201a   :  { %v2252_v6 = vpop.eup %2251 }
0x201b   :  { %v1523_v57 = vmul.f32 2.0, %v2252_v6  ;;  %v1525_v58 = vmul.f32 %v2252_v6, %v1423_v38  ;;  %v313_v38 = vrot.slane %v56_v37, %v312_v36 }
0x201d   :  { %v1830_v1 = vadd.f32 -1.0, %v1523_v57 }
0x201f   :  { %1527 = vrot.lane.b32.xlu1 %v1830_v1, %s2323_s1 }
0x2091   :  { %v1528_v0 = vpop.permute.xlu1 %1527 }
0x2092   :  { %v1530_v9 = vmul.f32 %v2252_v6, %v1528_v0 }
0x2094   :  { %1532 = vrot.lane.b32.xlu1 %v1530_v9, %s2324_s3 }
0x2106   :  { %v1533_v59 = vpop.permute.xlu1 %1532 }
0x2107   :  { %v1535_v60 = vadd.f32 %v1533_v59, %v1525_v58 }
0x2109   :  { %2253 = vtanh.f32 %v1535_v60 }
0x2113   :  { %v2254_v61 = vpop.eup %2253 }
0x2114   :  { %1538 = vrot.lane.b32.xlu0 %v2254_v61, %s2323_s1 }
0x2118   :  { %192 = vperm.xlu0 %2181, %v2413_v8  }
0x211c   :  { %2182 = vset.pattern.permute.xlu0 %v2337_v27 }
0x2186   :  { %v1539_v63 = vpop.permute.xlu0 %1538 }
0x2187   :  { %v2634_v2 = vmul.f32 %v2252_v6, %v1539_v63 }
0x2189   :  { %1554 = vrot.lane.b32.xlu1 %v2634_v2, %s2324_s3 }
0x2197   :  { %v193_v5 = vpop.permute.xlu0 %192 }
0x2198   :  { %v195_v7 = vmul.f32 %v2436_v11, %v193_v5  ;;  %v872_v5 = vsub.s32 5, %v2646_v34 }
0x219a   :  { %v196_v10 = vadd.f32 %v2442_v13, %v195_v7 }
0x21fb   :  { %v1555_v4 = vpop.permute.xlu1 %1554 }
0x21fc   :  { %2048 = vmatmul.mubr.msk.f32.vlgmr.msra.gmra.mrb[12].mxu0 %vm210_vm1, %v1555_v4  ;;  %v424_v4 = vsub.s32 1, %v2646_v34 }
0x21fe   :  { %v425_v7 = vrot.slane %v56_v37, %v424_v4 }
0x22cf   :  { %v1624_v12 = vpop.f32.mrb[12].mxu0 }
0x22d0   :  { %v1628_v14 = vadd.f32 %v1624_v12, %v196_v10  ;;  %v2049_v15 = vpop.f32.mrb[13].mxu0  ;;  %v648_v10 = vsub.s32 3, %v2646_v34 }
0x22d1   :  { %v873_v15 = vrot.slane %v56_v37, %v872_v5 }
0x22d2   :  { %v1832_v17 = vmul.f32 -1.442695, %v1628_v14  ;;  %v649_v14 = vrot.slane %v56_v37, %v648_v10 }
0x22d4   :  { %2255 = vpow2.f32 %v1832_v17  ;;  %v1096_v17 = vsub.s32 7, %v2646_v34 }
0x22de   :  { %v2256_v18 = vpop.eup %2255 }
0x22df   :  { %v1632_v20 = vadd.f32 1.0, %v2256_v18  ;;  %v1097_v18 = vrot.slane %v56_v37, %v1096_v17 }
0x22e1   :  { %2257 = vrcp.f32 %v1632_v20 }
0x22eb   :  { %v2258_v21 = vpop.eup %2257 }
0x22ec   :  { %v1635_v22 = vmul.f32 2.0, %v2258_v21  ;;  %v1637_v28 = vmul.f32 %v2258_v21, %v1535_v60 }
0x22ee   :  { %v1833_v24 = vadd.f32 -1.0, %v1635_v22 }
0x22f0   :  { %1639 = vrot.lane.b32.xlu1 %v1833_v24, %s2323_s1 }
0x2362   :  { %v1640_v25 = vpop.permute.xlu1 %1639 }
0x2363   :  { %v1642_v26 = vmul.f32 %v2258_v21, %v1640_v25 }
0x2365   :  { %1644 = vrot.lane.b32.xlu1 %v1642_v26, %s2324_s3 }
0x23d7   :  { %v1645_v29 = vpop.permute.xlu1 %1644 }
0x23d8   :  { %v2643_v30 = vadd.f32 %v1645_v29, %v1637_v28 }
0x23da   :  { %2259 = vtanh.f32 %v2643_v30 }
0x23e4   :  { %v2260_v35 = vpop.eup %2259 }
0x23e5   :  { %1650 = vrot.lane.b32.xlu0 %v2260_v35, %s2323_s1 }
0x23e9   :  { %202 = vperm.xlu0 %2182, %v2413_v8   ;;  %v57_v8 = vld [vmem:[%s2720_s4 + $0x8] sm:$0x3f] }
0x23ea   :  { %v1209_v47 = vrot.slane %v57_v8, %v312_v36  ;;  %v1433_v49 = vrot.slane %v57_v8, %v536_v39  ;;  %v1657_v50 = vrot.slane %v57_v8, %v760_v41  ;;  %v1769_v12 = vrot.slane %v57_v8, %v872_v5 }
0x23eb   :  { %v1321_v20 = vrot.slane %v57_v8, %v424_v4 }
0x23ed   :  { %315 = vrot.lane.b32.xlu0 %v313_v38, %s2338_s27 }
0x23f1   :  { %539 = vrot.lane.b32.xlu0 %v537_v40, %s2338_s27 }
0x23f5   :  { %763 = vrot.lane.b32.xlu0 %v761_v44, %s2338_s27 }
0x23f9   :  { %987 = vrot.lane.b32.xlu0 %v985_v46, %s2338_s27 }
0x23fd   :  { %1211 = vrot.lane.b32.xlu0 %v1209_v47, %s2338_s27 }
0x2401   :  { %1435 = vrot.lane.b32.xlu0 %v1433_v49, %s2338_s27 }
0x2405   :  { %1659 = vrot.lane.b32.xlu0 %v1657_v50, %s2338_s27 }
0x2409   :  { %1771 = vrot.lane.b32.xlu0 %v1769_v12, %s2338_s27 }
0x2457   :  { %v1651_v51 = vpop.permute.xlu0 %1650 }
0x2458   :  { %v2667_v52 = vmul.f32 %v2258_v21, %v1651_v51  ;;  %v1545_v21 = vrot.slane %v57_v8, %v648_v10 }
0x245a   :  { %1666 = vrot.lane.b32.xlu1 %v2667_v52, %s2324_s3 }
0x2468   :  { %v203_v55 = vpop.permute.xlu0 %202 }
0x2469   :  { %v205_v6 = vmul.f32 %v2436_v11, %v203_v55 }
0x246b   :  { %v206_v57 = vadd.f32 %v2442_v13, %v205_v6 }
0x246c   :  { %v316_v27 = vpop.permute.xlu0 %315 }
0x246d   :  { %v318_v33 = vmul.f32 %v316_v27, %v2449_v32 }
0x2470   :  { %v540_v34 = vpop.permute.xlu0 %539 }
0x2471   :  { %v542_v37 = vmul.f32 %v540_v34, %v2483_v19 }
0x2474   :  { %v764_v39 = vpop.permute.xlu0 %763 }
0x2475   :  { %v766_v44 = vmul.f32 %v764_v39, %v2517_v3 }
0x2478   :  { %v988_v8 = vpop.permute.xlu0 %987 }
0x2479   :  { %v990_v32 = vmul.f32 %v988_v8, %v2551_v56 }
0x247c   :  { %v1212_v19 = vpop.permute.xlu0 %1211 }
0x2480   :  { %v1436_v3 = vpop.permute.xlu0 %1435 }
0x2484   :  { %v1660_v56 = vpop.permute.xlu0 %1659 }
0x24cc   :  { %v1667_v53 = vpop.permute.xlu1 %1666 }
0x24cd   :  { %2059 = vmatmul.mubr.msk.f32.vlgmr.msra.gmra.mrb[12].mxu1 %vm210_vm1, %v1667_v53 }
0x25a0   :  { %v1736_v1 = vpop.f32.mrb[12].mxu1 }
0x25a1   :  { %v1740_v0 = vadd.f32 %v1736_v1, %v206_v57  ;;  %v2060_v9 = vpop.f32.mrb[13].mxu1 }
0x25a3   :  { %v1835_v58 = vmul.f32 -1.442695, %v1740_v0 }
0x25a5   :  { %2261 = vpow2.f32 %v1835_v58 }
0x25af   :  { %v2262_v59 = vpop.eup %2261 }
0x25b0   :  { %v1744_v60 = vadd.f32 1.0, %v2262_v59 }
0x25b2   :  { %2263 = vrcp.f32 %v1744_v60  ;;  %v1662_v60 = vmul.f32 %v1660_v56, %v2667_v52 }
0x25bc   :  { %v2674_v61 = vpop.eup %2263 }
0x25bd   :  { %v1747_v62 = vmul.f32 2.0, %v2674_v61  ;;  %v1749_v22 = vmul.f32 %v2674_v61, %v2643_v30 }
0x25bf   :  { %v1836_v63 = vadd.f32 -1.0, %v1747_v62 }
0x25c1   :  { %1751 = vrot.lane.b32.xlu1 %v1836_v63, %s2323_s1 }
0x2633   :  { %v1752_v11 = vpop.permute.xlu1 %1751 }
0x2634   :  { %v1754_v13 = vmul.f32 %v2674_v61, %v1752_v11 }
0x2636   :  { %1756 = vrot.lane.b32.xlu1 %v1754_v13, %s2324_s3 }
0x263a   :  { %427 = vrot.lane.b32.xlu1 %v425_v7, %s2338_s27 }
0x263e   :  { %651 = vrot.lane.b32.xlu1 %v649_v14, %s2338_s27 }
0x2642   :  { %875 = vrot.lane.b32.xlu1 %v873_v15, %s2338_s27 }
0x2646   :  { %1099 = vrot.lane.b32.xlu1 %v1097_v18, %s2338_s27 }
0x264a   :  { %1323 = vrot.lane.b32.xlu1 %v1321_v20, %s2338_s27 }
0x264e   :  { %1547 = vrot.lane.b32.xlu1 %v1545_v21, %s2338_s27 }
0x26a8   :  { %v1757_v24 = vpop.permute.xlu1 %1756 }
0x26a9   :  { %v1759_v25 = vadd.f32 %v1757_v24, %v1749_v22 }
0x26ab   :  { %2265 = vtanh.f32 %v1759_v25 }
0x26ac   :  { %v428_v28 = vpop.permute.xlu1 %427 }
0x26ad   :  { %v430_v29 = vmul.f32 %v428_v28, %v2466_v54 }
0x26af   :  { %v431_v35 = vadd.f32 %v430_v29, %v318_v33 }
0x26b0   :  { %v652_v36 = vpop.permute.xlu1 %651 }
0x26b1   :  { %v543_v38 = vadd.f32 %v542_v37, %v431_v35  ;;  %v654_v30 = vmul.f32 %v652_v36, %v2500_v42  ;;  %v1214_v42 = vmul.f32 %v1212_v19, %v2585_v48 }
0x26b3   :  { %v655_v40 = vadd.f32 %v654_v30, %v543_v38 }
0x26b4   :  { %v876_v41 = vpop.permute.xlu1 %875 }
0x26b5   :  { %v2266_v26 = vpop.eup %2265  ;;  %v767_v45 = vadd.f32 %v766_v44, %v655_v40  ;;  %v878_v46 = vmul.f32 %v876_v41, %v2534_v31  ;;  %v1438_v31 = vmul.f32 %v1436_v3, %v2618_v43  ;;  %v1784_v43 = vstv %s2721_s5 }
0x26b6   :  { %1762 = vrot.lane.b32.xlu1 %v2266_v26, %s2323_s1 }
0x26b7   :  { %v879_v54 = vadd.f32 %v878_v46, %v767_v45 }
0x26b8   :  { %v1100_v47 = vpop.permute.xlu1 %1099 }
0x26b9   :  { %v991_v49 = vadd.f32 %v990_v32, %v879_v54  ;;  %v1102_v50 = vmul.f32 %v1100_v47, %v2568_v23  ;;  %v1772_v23 = vpop.permute.xlu0 %1771 }
0x26bb   :  { %v1103_v51 = vadd.f32 %v1102_v50, %v991_v49 }
0x26bc   :  { %v1324_v53 = vpop.permute.xlu1 %1323 }
0x26bd   :  { %v1215_v55 = vadd.f32 %v1214_v42, %v1103_v51  ;;  %v1326_v6 = vmul.f32 %v1324_v53, %v2602_v16 }
0x26bf   :  { %v1327_v57 = vadd.f32 %v1326_v6, %v1215_v55 }
0x26c0   :  { %v1548_v1 = vpop.permute.xlu1 %1547 }
0x26c1   :  { %v1439_v0 = vadd.f32 %v1438_v31, %v1327_v57  ;;  %v1550_v9 = vmul.f32 %v1548_v1, %v2634_v2 }
0x26c3   :  { %v1551_v58 = vadd.f32 %v1550_v9, %v1439_v0 }
0x26c5   :  { %v1663_v48 = vadd.f32 %v1662_v60, %v1551_v58 }
0x2728   :  { %v1763_v59 = vpop.permute.xlu1 %1762 }
0x2729   :  { %v1765_v62 = vmul.f32 %v2674_v61, %v1763_v59 }
0x272b   :  { %v1774_v63 = vmul.f32 %v1772_v23, %v1765_v62 }
0x272d   :  { %v1775_v4 = vadd.f32 %v1774_v63, %v1663_v48 }
0x272f   :  { %1777 = vrot.lane.b32.xlu1 %v1775_v4, %s2324_s3 }
0x27a1   :  { %v1778_v16 = vpop.permute.xlu1 %1777 }
0x27a2   :  { %v1780_v11 = vsel %vm210_vm1, %v1778_v16, 0.0 }
0x27a3   :  { %1781 = vadd.xlane.f32.xlu0 %v1780_v11 }
0x2830   :  { %v1782_v2 = vpop.xlane.xlu0 %1781 }
0x2831   :  { %v1785_v13 = vadd.f32 %v1784_v43, %v1782_v2 }
0x2833   :  { %1787 = vst.msk [vmem:[%s2722_s6] sm:$0xff] %vm1786_vm2, %v1785_v13 }
0x2834   :  { %1792 = vsyncpa [#allocation5], 1 }
0x2835   :  { %1793 = vsyncpa [#allocation7], 1 }

</bundles_post_ra>
